<compile_context>
chip_gen: v5e
topology: v5e:2x2
jax: 0.10.0
libtpu: 0.0.40
codegen_flags: <defaults>
</compile_context>

<pallas_src>
import functools

import jax
import jax.numpy as jnp
from jax.experimental import pallas as pl
from jax.experimental.pallas import tpu as pltpu


def autoencoder_kernel(x_ref,
                       w1_ref, b1_ref,
                       w2_ref, b2_ref,
                       w3_ref, b3_ref,
                       w4_ref, b4_ref,
                       o_ref):
    # --- F.normalize(input): x / max(||x||_2, 1e-12) == x * rsqrt(max(sum(x^2), 1e-24))
    x = x_ref[...].astype(jnp.float32)
    ss = jnp.sum(x * x, axis=-1, keepdims=True)
    h = x * jax.lax.rsqrt(jnp.maximum(ss, 1e-24))

    cdt = w1_ref.dtype  # bf16 compute dtype for the MXU

    # --- encoder: Linear -> ReLU -> Linear (no activation on last) ---
    h = jnp.dot(h.astype(cdt), w1_ref[...],
                preferred_element_type=jnp.float32) + b1_ref[...]
    h = jnp.maximum(h, 0.0)                       # ReLU (f32)
    h = jnp.dot(h.astype(cdt), w2_ref[...],
                preferred_element_type=jnp.float32) + b2_ref[...]

    # --- decoder: Linear -> ReLU -> Linear (no activation on last) ---
    h = jnp.dot(h.astype(cdt), w3_ref[...],
                preferred_element_type=jnp.float32) + b3_ref[...]
    h = jnp.maximum(h, 0.0)                       # ReLU (f32)
    h = jnp.dot(h.astype(cdt), w4_ref[...],
                preferred_element_type=jnp.float32) + b4_ref[...]

    o_ref[...] = h.astype(o_ref.dtype)


def _round_up(x, m):
    return (x + m - 1) // m * m


def _vmem_capacity_bytes():
    try:
        return int(pltpu.get_tpu_info().vmem_capacity_bytes)
    except Exception:
        return 64 * 1024 * 1024  # conservative: v7x per-TensorCore VMEM


def prepare_params(params, compute_dtype=jnp.bfloat16):
    """One-time param prep (outside jit): pad bottleneck dim d2 up to 128 lanes
    (exact: padded enc2 output columns are zero and hit zero rows of dec1's
    weight) and cast weights to the bf16 MXU compute dtype. Biases stay f32.
    """
    w1, b1 = params["enc1"]
    w2, b2 = params["enc2"]
    w3, b3 = params["dec1"]
    w4, b4 = params["dec2"]
    d2 = w2.shape[1]
    d2p = max(_round_up(d2, 128), 128)
    if d2p != d2:
        w2 = jnp.pad(w2, ((0, 0), (0, d2p - d2)))
        b2 = jnp.pad(b2, ((0, 0), (0, d2p - d2)))
        w3 = jnp.pad(w3, ((0, d2p - d2), (0, 0)))
    cast = lambda w: w.astype(compute_dtype)
    return {
        "enc1": (cast(w1), b1.astype(jnp.float32)),
        "enc2": (cast(w2), b2.astype(jnp.float32)),
        "dec1": (cast(w3), b3.astype(jnp.float32)),
        "dec2": (cast(w4), b4.astype(jnp.float32)),
    }


@functools.partial(jax.jit, static_argnames=("block_b",))
def autoencoder_forward(x, prepared_params, *, block_b=128):
    """x: [B, n_items] float32. prepared_params: output of prepare_params()."""
    B, n_items = x.shape
    w1, b1 = prepared_params["enc1"]
    w2, b2 = prepared_params["enc2"]
    w3, b3 = prepared_params["dec1"]
    w4, b4 = prepared_params["dec2"]
    d1 = w1.shape[1]
    d2p = w2.shape[1]

    # Row tile: multiple of 8 sublanes; 128 by default so realistic batches
    # give each TensorCore several grid steps to pipeline the tile DMAs.
    block = min(block_b, _round_up(B, 8))
    grid = (pl.cdiv(B, block),)

    # Weights/biases: whole array resident in VMEM (single buffer, no re-DMA).
    resident = pl.BlockSpec(memory_space=pltpu.MemorySpace.VMEM)

    wdt = jnp.dtype(w1.dtype).itemsize   # 2 (bf16)
    fdt = jnp.dtype(jnp.float32).itemsize
    weight_bytes = (w1.size + w2.size + w3.size + w4.size) * wdt
    bias_bytes = (b1.size + b2.size + b3.size + b4.size) * fdt
    tile_bytes = 2 * 2 * block * n_items * fdt          # x + out tiles, double-buffered
    act_bytes = 4 * block * (d1 + d2p) * fdt            # intermediate activation headroom
    need = weight_bytes + bias_bytes + tile_bytes + act_bytes
    cap = _vmem_capacity_bytes()
    vmem_limit = int(min(max(need * 3 // 2, 32 * 1024 * 1024), int(cap * 0.85)))

    flops = 2 * B * (n_items * d1 + d1 * d2p + d2p * d1 + d1 * n_items)
    bytes_accessed = int(2 * B * n_items * fdt + weight_bytes + bias_bytes)
    cost = pl.CostEstimate(flops=int(flops),
                           transcendentals=int(B),      # one rsqrt per row
                           bytes_accessed=bytes_accessed)

    return pl.pallas_call(
        autoencoder_kernel,
        out_shape=jax.ShapeDtypeStruct((B, n_items), x.dtype),
        grid=grid,
        in_specs=[
            pl.BlockSpec((block, n_items), lambda i: (i, 0)),   # x row tile
            resident, resident,                                 # w1, b1
            resident, resident,                                 # w2, b2
            resident, resident,                                 # w3, b3
            resident, resident,                                 # w4, b4
        ],
        out_specs=pl.BlockSpec((block, n_items), lambda i: (i, 0)),
        compiler_params=pltpu.CompilerParams(
            dimension_semantics=("parallel",),
            vmem_limit_bytes=vmem_limit),
        cost_estimate=cost,
    )(x, w1, b1, w2, b2, w3, b3, w4, b4)


def init_params(key, encoder_dims):
    """Deterministic init mimicking nn.Linear default (uniform +/- 1/sqrt(fan_in)).

    Weights are stored transposed as [in, out] for the kernel. f32.
    """
    decoder_dims = encoder_dims[::-1]
    names = ["enc1", "enc2", "dec1", "dec2"]
    dim_pairs = (list(zip(encoder_dims[:-1], encoder_dims[1:])) +
                 list(zip(decoder_dims[:-1], decoder_dims[1:])))
    params = {}
    for name, (fan_in, fan_out) in zip(names, dim_pairs):
        key, kw, kb = jax.random.split(key, 3)
        bound = 1.0 / jnp.sqrt(jnp.float32(fan_in))
        w = jax.random.uniform(kw, (fan_in, fan_out), jnp.float32, -bound, bound)
        b = jax.random.uniform(kb, (1, fan_out), jnp.float32, -bound, bound)
        params[name] = (w, b)
    return params


def reference_forward(x, params):
    """Plain-JAX f32 reference matching the PyTorch module semantics."""
    norm = jnp.sqrt(jnp.sum(x * x, axis=-1, keepdims=True))
    h = x / jnp.maximum(norm, 1e-12)
    w1, b1 = params["enc1"]; w2, b2 = params["enc2"]
    w3, b3 = params["dec1"]; w4, b4 = params["dec2"]
    h = jnp.maximum(h @ w1 + b1, 0.0)
    h = h @ w2 + b2
    h = jnp.maximum(h @ w3 + b3, 0.0)
    h = h @ w4 + b4
    return h


if __name__ == "__main__":
    # encoder_dims = [n_items, dim1, dim2]; decoder is the reverse.
    n_items, dim1, dim2 = 256, 128, 64
    encoder_dims = [n_items, dim1, dim2]

    key = jax.random.PRNGKey(0)
    key, kx = jax.random.split(key)

    batch = 512  # 4 grid steps of 128 rows -> pipelined tiles on each core.
    x = jax.random.normal(kx, (batch, n_items), jnp.float32)
    params = init_params(key, encoder_dims)
    prepared = prepare_params(params)   # one-time pad + bf16 cast (outside jit)

    # bf16 matmuls with f32 accumulation vs. an all-f32 reference: use
    # bf16-appropriate tolerances (outputs here are O(0.1), errors O(1e-3)).
    atol = rtol = 2e-2

    out = jax.block_until_ready(autoencoder_forward(x, prepared))
    ref = reference_forward(x, params)
    assert out.shape == (batch, n_items)
    assert bool(jnp.allclose(out, ref, atol=atol, rtol=rtol)), \
        "mismatch vs reference (full batch)"

    # Ragged batch exercises the masked last-tile path (no jnp.pad / slice).
    x_small = x[:13]
    out_small = jax.block_until_ready(autoencoder_forward(x_small, prepared))
    ref_small = reference_forward(x_small, params)
    assert out_small.shape == (13, n_items)
    assert bool(jnp.allclose(out_small, ref_small, atol=atol, rtol=rtol)), \
        "mismatch vs reference (ragged batch)"

    # Tiny exact-tile batch.
    x8 = x[:8]
    out8 = jax.block_until_ready(autoencoder_forward(x8, prepared))
    ref8 = reference_forward(x8, params)
    assert out8.shape == (8, n_items)
    assert bool(jnp.allclose(out8, ref8, atol=atol, rtol=rtol)), \
        "mismatch vs reference (small batch)"

    print("KERNEL_OK")
</pallas_src>

<mosaic_0001>
module attributes {stable_mosaic.version = 11 : i64} {
  func.func @autoencoder_kernel(%arg0: i32, %arg1: memref<128x256xf32, #tpu.memory_space<vmem>>, %arg2: memref<256x128xbf16, #tpu.memory_space<vmem>>, %arg3: memref<1x128xf32, #tpu.memory_space<vmem>>, %arg4: memref<128x128xbf16, #tpu.memory_space<vmem>>, %arg5: memref<1x128xf32, #tpu.memory_space<vmem>>, %arg6: memref<128x128xbf16, #tpu.memory_space<vmem>>, %arg7: memref<1x128xf32, #tpu.memory_space<vmem>>, %arg8: memref<128x256xbf16, #tpu.memory_space<vmem>>, %arg9: memref<1x256xf32, #tpu.memory_space<vmem>>, %arg10: memref<128x256xf32, #tpu.memory_space<vmem>>) attributes {dimension_semantics = [#tpu.dimension_semantics<parallel>], iteration_bounds = array<i64: 4>, scalar_prefetch = 0 : i64, scratch_operands = 0 : i64, tpu.core_type = #tpu.core_type<tc>, window_params = [{transform_indices = @transform_0, window_bounds = array<i64: 128, 256>}, {pipeline_mode = #tpu.pipeline_mode<synchronous>, transform_indices = @transform_1, window_bounds = array<i64: 256, 128>}, {pipeline_mode = #tpu.pipeline_mode<synchronous>, transform_indices = @transform_2, window_bounds = array<i64: 1, 128>}, {pipeline_mode = #tpu.pipeline_mode<synchronous>, transform_indices = @transform_3, window_bounds = array<i64: 128, 128>}, {pipeline_mode = #tpu.pipeline_mode<synchronous>, transform_indices = @transform_4, window_bounds = array<i64: 1, 128>}, {pipeline_mode = #tpu.pipeline_mode<synchronous>, transform_indices = @transform_5, window_bounds = array<i64: 128, 128>}, {pipeline_mode = #tpu.pipeline_mode<synchronous>, transform_indices = @transform_6, window_bounds = array<i64: 1, 128>}, {pipeline_mode = #tpu.pipeline_mode<synchronous>, transform_indices = @transform_7, window_bounds = array<i64: 128, 256>}, {pipeline_mode = #tpu.pipeline_mode<synchronous>, transform_indices = @transform_8, window_bounds = array<i64: 1, 256>}, {transform_indices = @transform_9, window_bounds = array<i64: 128, 256>}]} {
    %c0 = arith.constant 0 : index
    %c0_0 = arith.constant 0 : index
    %0 = vector.load %arg1[%c0, %c0_0] : memref<128x256xf32, #tpu.memory_space<vmem>>, vector<128x256xf32>
    %1 = arith.mulf %0, %0 : vector<128x256xf32>
    %cst = arith.constant dense<0.000000e+00> : vector<128xf32>
    %2 = vector.multi_reduction <add>, %1, %cst [1] : vector<128x256xf32> to vector<128xf32>
    %3 = vector.shape_cast %2 : vector<128xf32> to vector<128x1xf32>
    %cst_1 = arith.constant 1.000000e-24 : f32
    %4 = vector.broadcast %cst_1 : f32 to vector<128x1xf32>
    %5 = arith.maximumf %3, %4 : vector<128x1xf32>
    %6 = math.rsqrt %5 : vector<128x1xf32>
    %7 = vector.broadcast %6 : vector<128x1xf32> to vector<128x256xf32>
    %8 = arith.mulf %0, %7 : vector<128x256xf32>
    %9 = arith.truncf %8 : vector<128x256xf32> to vector<128x256xbf16>
    %c0_2 = arith.constant 0 : index
    %c0_3 = arith.constant 0 : index
    %10 = vector.load %arg2[%c0_2, %c0_3] : memref<256x128xbf16, #tpu.memory_space<vmem>>, vector<256x128xbf16>
    %cst_4 = arith.constant dense<0.000000e+00> : vector<128x128xf32>
    %11 = tpu.matmul %9, %10, %cst_4 {dimension_numbers = #tpu.dot_dimension_numbers<[1], [0], [0], [1], [0, 0, 1, 1], [], []>} : vector<128x256xbf16>, vector<256x128xbf16>, vector<128x128xf32> -> vector<128x128xf32>
    %c0_5 = arith.constant 0 : index
    %c0_6 = arith.constant 0 : index
    %12 = vector.load %arg3[%c0_5, %c0_6] : memref<1x128xf32, #tpu.memory_space<vmem>>, vector<1x128xf32>
    %13 = vector.broadcast %12 : vector<1x128xf32> to vector<128x128xf32>
    %14 = arith.addf %11, %13 : vector<128x128xf32>
    %cst_7 = arith.constant 0.000000e+00 : f32
    %15 = vector.broadcast %cst_7 : f32 to vector<128x128xf32>
    %16 = arith.maximumf %14, %15 : vector<128x128xf32>
    %17 = arith.truncf %16 : vector<128x128xf32> to vector<128x128xbf16>
    %c0_8 = arith.constant 0 : index
    %c0_9 = arith.constant 0 : index
    %18 = vector.load %arg4[%c0_8, %c0_9] : memref<128x128xbf16, #tpu.memory_space<vmem>>, vector<128x128xbf16>
    %cst_10 = arith.constant dense<0.000000e+00> : vector<128x128xf32>
    %19 = tpu.matmul %17, %18, %cst_10 {dimension_numbers = #tpu.dot_dimension_numbers<[1], [0], [0], [1], [0, 0, 1, 1], [], []>} : vector<128x128xbf16>, vector<128x128xbf16>, vector<128x128xf32> -> vector<128x128xf32>
    %c0_11 = arith.constant 0 : index
    %c0_12 = arith.constant 0 : index
    %20 = vector.load %arg5[%c0_11, %c0_12] : memref<1x128xf32, #tpu.memory_space<vmem>>, vector<1x128xf32>
    %21 = vector.broadcast %20 : vector<1x128xf32> to vector<128x128xf32>
    %22 = arith.addf %19, %21 : vector<128x128xf32>
    %23 = arith.truncf %22 : vector<128x128xf32> to vector<128x128xbf16>
    %c0_13 = arith.constant 0 : index
    %c0_14 = arith.constant 0 : index
    %24 = vector.load %arg6[%c0_13, %c0_14] : memref<128x128xbf16, #tpu.memory_space<vmem>>, vector<128x128xbf16>
    %cst_15 = arith.constant dense<0.000000e+00> : vector<128x128xf32>
    %25 = tpu.matmul %23, %24, %cst_15 {dimension_numbers = #tpu.dot_dimension_numbers<[1], [0], [0], [1], [0, 0, 1, 1], [], []>} : vector<128x128xbf16>, vector<128x128xbf16>, vector<128x128xf32> -> vector<128x128xf32>
    %c0_16 = arith.constant 0 : index
    %c0_17 = arith.constant 0 : index
    %26 = vector.load %arg7[%c0_16, %c0_17] : memref<1x128xf32, #tpu.memory_space<vmem>>, vector<1x128xf32>
    %27 = vector.broadcast %26 : vector<1x128xf32> to vector<128x128xf32>
    %28 = arith.addf %25, %27 : vector<128x128xf32>
    %cst_18 = arith.constant 0.000000e+00 : f32
    %29 = vector.broadcast %cst_18 : f32 to vector<128x128xf32>
    %30 = arith.maximumf %28, %29 : vector<128x128xf32>
    %31 = arith.truncf %30 : vector<128x128xf32> to vector<128x128xbf16>
    %c0_19 = arith.constant 0 : index
    %c0_20 = arith.constant 0 : index
    %32 = vector.load %arg8[%c0_19, %c0_20] : memref<128x256xbf16, #tpu.memory_space<vmem>>, vector<128x256xbf16>
    %cst_21 = arith.constant dense<0.000000e+00> : vector<128x256xf32>
    %33 = tpu.matmul %31, %32, %cst_21 {dimension_numbers = #tpu.dot_dimension_numbers<[1], [0], [0], [1], [0, 0, 1, 1], [], []>} : vector<128x128xbf16>, vector<128x256xbf16>, vector<128x256xf32> -> vector<128x256xf32>
    %c0_22 = arith.constant 0 : index
    %c0_23 = arith.constant 0 : index
    %34 = vector.load %arg9[%c0_22, %c0_23] : memref<1x256xf32, #tpu.memory_space<vmem>>, vector<1x256xf32>
    %35 = vector.broadcast %34 : vector<1x256xf32> to vector<128x256xf32>
    %36 = arith.addf %33, %35 : vector<128x256xf32>
    %c0_24 = arith.constant 0 : index
    %c0_25 = arith.constant 0 : index
    %37 = vector.load %arg10[%c0_24, %c0_25] : memref<128x256xf32, #tpu.memory_space<vmem>>, vector<128x256xf32>
    tpu.vector_store %arg10[%c0_24, %c0_25], %36 {strides = array<i32>} : memref<128x256xf32, #tpu.memory_space<vmem>>, vector<128x256xf32>,
    return
  }
  func.func @transform_0(%arg0: i32) -> (i32, i32) {
    %c0_i32 = arith.constant 0 : i32
    %c0_i32_0 = arith.constant 0 : i32
    return %arg0, %c0_i32 : i32, i32
  }
  func.func @transform_1(%arg0: i32) -> (i32, i32) {
    %c0_i32 = arith.constant 0 : i32
    %c0_i32_0 = arith.constant 0 : i32
    %c0_i32_1 = arith.constant 0 : i32
    return %c0_i32, %c0_i32_0 : i32, i32
  }
  func.func @transform_2(%arg0: i32) -> (i32, i32) {
    %c0_i32 = arith.constant 0 : i32
    %c0_i32_0 = arith.constant 0 : i32
    %c0_i32_1 = arith.constant 0 : i32
    return %c0_i32, %c0_i32_0 : i32, i32
  }
  func.func @transform_3(%arg0: i32) -> (i32, i32) {
    %c0_i32 = arith.constant 0 : i32
    %c0_i32_0 = arith.constant 0 : i32
    %c0_i32_1 = arith.constant 0 : i32
    return %c0_i32, %c0_i32_0 : i32, i32
  }
  func.func @transform_4(%arg0: i32) -> (i32, i32) {
    %c0_i32 = arith.constant 0 : i32
    %c0_i32_0 = arith.constant 0 : i32
    %c0_i32_1 = arith.constant 0 : i32
    return %c0_i32, %c0_i32_0 : i32, i32
  }
  func.func @transform_5(%arg0: i32) -> (i32, i32) {
    %c0_i32 = arith.constant 0 : i32
    %c0_i32_0 = arith.constant 0 : i32
    %c0_i32_1 = arith.constant 0 : i32
    return %c0_i32, %c0_i32_0 : i32, i32
  }
  func.func @transform_6(%arg0: i32) -> (i32, i32) {
    %c0_i32 = arith.constant 0 : i32
    %c0_i32_0 = arith.constant 0 : i32
    %c0_i32_1 = arith.constant 0 : i32
    return %c0_i32, %c0_i32_0 : i32, i32
  }
  func.func @transform_7(%arg0: i32) -> (i32, i32) {
    %c0_i32 = arith.constant 0 : i32
    %c0_i32_0 = arith.constant 0 : i32
    %c0_i32_1 = arith.constant 0 : i32
    return %c0_i32, %c0_i32_0 : i32, i32
  }
  func.func @transform_8(%arg0: i32) -> (i32, i32) {
    %c0_i32 = arith.constant 0 : i32
    %c0_i32_0 = arith.constant 0 : i32
    %c0_i32_1 = arith.constant 0 : i32
    return %c0_i32, %c0_i32_0 : i32, i32
  }
  func.func @transform_9(%arg0: i32) -> (i32, i32) {
    %c0_i32 = arith.constant 0 : i32
    %c0_i32_0 = arith.constant 0 : i32
    return %arg0, %c0_i32 : i32, i32
  }
}

</mosaic_0001>

<bundles_post_ra>
// kernel: autoencoder_forward.1
= control target key start
LH: loop header
LB: loop body
LE: loop exit
PB: predicated region body
PF: predicated region fallthrough
CT: control target
= control target key end

     0   :  { %s3130_s0 = inlined_call_operand.hbm [shape: f32[512,256], index: 0, kind: input, shape index: {}]   ;;  %s3131_s1 = inlined_call_operand.hbm [shape: bf16[256,128], index: 1, kind: input, shape index: {}]   ;;  %s3132_s2 = inlined_call_operand.vmem [shape: f32[1,128], index: 2, kind: input, shape index: {}]   ;;  %s3133_s3 = inlined_call_operand.hbm [shape: bf16[128,128], index: 3, kind: input, shape index: {}]   ;;  %s3134_s4 = inlined_call_operand.vmem [shape: f32[1,128], index: 4, kind: input, shape index: {}]   ;;  %s3135_s5 = inlined_call_operand.hbm [shape: bf16[128,128], index: 5, kind: input, shape index: {}]   ;;  %s3136_s6 = inlined_call_operand.hbm [shape: f32[1,128], index: 6, kind: input, shape index: {}]   ;;  %s3137_s7 = inlined_call_operand.hbm [shape: bf16[128,256], index: 7, kind: input, shape index: {}]   ;;  %s3138_s8 = inlined_call_operand.vmem [shape: f32[1,256], index: 8, kind: input, shape index: {}]   ;;  %s3139_s9 = inlined_call_operand.hbm [shape: f32[512,256], index: 9, kind: output, shape index: {}]  }
   0x1   :  { %3140 = sst [smem:[#allocation19_spill]] %s3131_s1 }
   0x2   :  { %3141 = sst [smem:[#allocation20_spill]] %s3133_s3 }
   0x3   :  { %3142 = sst [smem:[#allocation21_spill]] %s3135_s5 }
   0x4   :  { %3143 = sst [smem:[#allocation22_spill]] %s3136_s6 }
   0x5   :  { %14 = vsyncpa [#allocation3], 0 }
   0x6   :  { %16 = vsyncpa [#allocation3 + $0x1], 0 }
   0x7   :  { %17 = vsyncpa [#allocation6], 0 }
   0x8   :  { %18 = vsyncpa [#allocation9], 0 }
   0x9   :  { %19 = vsyncpa [#allocation12], 0 }
   0xa   :  { %20 = vsyncpa [#allocation4], 0 }
   0xb   :  { %22 = vsyncpa [#allocation4 + $0x1], 0  ;;  %s2412_s30 = smov 0   ;;  %s2414_s10 = smov 0  }
   0xc   :  { %s2416_s11 = smov 0   ;;  %s2418_s12 = smov 0  }
   0xd LB: > { %s3144_s1 = sld [smem:[#allocation19_spill]]  ;;  %s2436_s16 = sadd.s32 4294967295, %s2347_s12   ;;  %s2347_s12 = sphi %s2418_s12, %s3164_s12   ;;  %s2343_s11 = sphi %s2416_s11, %s3163_s11   ;;  %s2339_s10 = sphi %s2414_s10, %s3162_s10   ;;  %s2335_s30 = sphi %s2412_s30, %s3161_s30  }
   0xe   : > { %p1664_p0 = scmp.ge.s32.totalorder %s2347_s12, 1  ;;  %p49_p1 = scmp.eq.s32.totalorder %s2436_s16, 0 }
   0xf   : > { %p253_p2 = scmp.lt.s32.totalorder %s2347_s12, 5  ;;  %s2349_s18 = smov [#allocation5]  }
  0x10   : > { %s266_s19 = sshll.u32 %s2349_s18, 4  ;;  %s3146_s5 = sld [smem:[#allocation21_spill]]  ;;  %s267_s19 = int_to_ptr.vmem [resolvable:$true] %s266_s19 }
  0x11   : > { %p2441_p3 = pnand %p1664_p0, %p253_p2  ;;  %s3148_s3 = sld [smem:[#allocation20_spill]] }
  0x12   : > { %s2350_s27 = smov [#allocation8]   ;;  %s2351_s29 = smov 64  }
  0x13   : > { %s264_s15 = sshll.u32 %s3144_s1, 4  ;;  %p1973_p4 = pneg %p2441_p3  ;;  %s265_s15 = int_to_ptr.hbm [resolvable:$true] %s264_s15 }
  0x14   : > { %s300_s28 = sshll.u32 %s2350_s27, 4  ;;  %s2352_s13 = smov 4   ;;  %s301_s28 = int_to_ptr.vmem [resolvable:$true] %s300_s28 }
  0x15   : > { %p2452_p5 = pnand %p1973_p4, %p49_p1  ;;  %s3149_s6 = sld [smem:[#allocation22_spill]] }
  0x16   : > { %s298_s22 = sshll.u32 %s3146_s5, 4  ;;  %s2353_s21 = smov [#allocation7]   ;;  %s299_s22 = int_to_ptr.hbm [resolvable:$true] %s298_s22 }
  0x17   : > { %s281_s26 = sshll.u32 %s3148_s3, 4  ;;  %s283_s1 = sshll.u32 %s2353_s21, 4  ;;  %s282_s26 = int_to_ptr.hbm [resolvable:$true] %s281_s26  ;;  %s284_s1 = int_to_ptr.vmem [resolvable:$true] %s283_s1 }
  0x18   : > { %1976 = dma.hbm_to_vmem [thread:$0]  (!%p2452_p5), %s265_s15, 2048, %s267_s19, [#allocation6], %s2351_s29, %s2351_s29, %s2352_s13  }
  0x19   : > { %1982 = dma.hbm_to_vmem [thread:$0]  (!%p2452_p5), %s299_s22, 1024, %s301_s28, [#allocation9], %s2351_s29, %s2351_s29, %s2352_s13  }
  0x1a   : > { %1979 = dma.hbm_to_vmem [thread:$0]  (!%p2452_p5), %s282_s26, 1024, %s284_s1, [#allocation6], %s2351_s29, %s2351_s29, %s2352_s13  }
  0x1b   : > { %s313_s20 = sshll.u32 %s3149_s6, 4  ;;  %s2354_s15 = smov [#allocation10]   ;;  %s314_s20 = int_to_ptr.hbm [resolvable:$true] %s313_s20 }
  0x1c   : > { %s315_s19 = sshll.u32 %s2354_s15, 4  ;;  %s324_s25 = sshll.u32 %s3137_s7, 4  ;;  %s316_s19 = int_to_ptr.vmem [resolvable:$true] %s315_s19  ;;  %s325_s25 = int_to_ptr.hbm [resolvable:$true] %s324_s25 }
  0x1d   : > { %1985 = dma.hbm_to_vmem [thread:$0]  (!%p2452_p5), %s314_s20, 16, %s316_s19, [#allocation9]  }
  0x1e   : > { %s2355_s27 = smov [#allocation11]   ;;  %s2356_s26 = smov 128  }
  0x1f   : > { %s326_s1 = sshll.u32 %s2355_s27, 4  ;;  %s2357_s28 = smov 8   ;;  %s327_s1 = int_to_ptr.vmem [resolvable:$true] %s326_s1 }
  0x20   : > { %1988 = dma.hbm_to_vmem [thread:$0]  (!%p2452_p5), %s325_s25, 2048, %s327_s1, [#allocation12], %s2356_s26, %s2356_s26, %s2357_s28  }
  0x21   : > { %s1663_s29 = sadd.s32 4294967294, %s2347_s12   ;;  %s2477_s13 = sadd.s32 1, %s2347_s12  }
  0x22   : > { %s35_s14 = sadd.s32 1, %s2343_s11  ;;  %s32_s18 = ssub.s32 %s2347_s12, %s2477_s13 }
  0x23   : > { %p42_p6 = scmp.ne.s32.totalorder %s2343_s11, %s2339_s10  ;;  %p33_p7 = scmp.eq.s32.totalorder %s32_s18, 0 }
  0x24   : > { %p43_p8 = scmp.eq.s32.totalorder %s2347_s12, 0  ;;  %p48_p9 = scmp.ne.s32.totalorder %s2339_s10, %s2335_s30 }
  0x25   : > { %p240_p10 = scmp.eq.s32.totalorder %s2436_s16, 3  ;;  %p246_p0 = scmp.eq.s32.totalorder %s1663_s29, 3 }
  0x26   : > { %s2489_s20 = scalar_select %p33_p7, %s2343_s11, %s35_s14  }
  0x27   : > { %p2491_p11 = por %p43_p8, %p42_p6  ;;  %p2497_p12 = por %p49_p1, %p48_p9 }
  0x28   : > { %p2501_p13 = por %p240_p10, %p42_p6  ;;  %p2002_p2 = scmp.lt.s32.totalorder %s2347_s12, 4 }
  0x29   : > { %s343_s19 = sand.u32 1, %s2343_s11   ;;  %p2507_p4 = por %p246_p0, %p48_p9 }
  0x2a   : > { %s1671_s24 = sshll.u32 %s343_s19, 8  ;;  %s1882_s25 = sshll.u32 %s2347_s12, 8 }
  0x2b   : > { %s353_s26 = scalar_lea.hbm %s3130_s0, %s1882_s25  ;;  %s347_s14 = scalar_lea.vmem [#allocation2], %s1671_s24 }
  0x2c   : > { %s354_s28 = sshll.u32 %s353_s26, 4  ;;  %s356_s18 = sshll.u32 %s347_s14, 4  ;;  %s355_s28 = int_to_ptr.hbm [resolvable:$true] %s354_s28  ;;  %s357_s18 = int_to_ptr.vmem [resolvable:$true] %s356_s18 }
  0x2d   : > { %p2517_p5 = pnand %p2002_p2, %p2491_p11  ;;  %s344_s3 = scalar_lea.sflag [#allocation3], %s343_s19 }
  0x2e   : > { %s2239_s5 = sshra.s32 %s355_s28, 4  ;;  %s2246_s27 = scalar_lea.hbm %s3130_s0, 1024  ;;  %s2240_s5 = int_to_ptr.hbm [resolvable:$true] %s2239_s5 }
  0x2f   : > { %s2241_s6 = scalar_lea.hbm %s2240_s5, 256  ;;  %p2243_p7 = pneg %p2517_p5 }
  0x30   : > { %p2242_p6 = scmp.ne.s32.totalorder %s2240_s5, %s2241_s6  ;;  %p2247_p10 = scmp.lt.s32.totalorder %s2240_s5, %s3130_s0 }
  0x31   : > { %p2248_p11 = scmp.lt.s32.totalorder %s2246_s27, %s2241_s6 }
  0x32   : > { %p2244_p8 = pnand %p2243_p7, %p2242_p6 }
  0x33   : > { %p2249_p0 = por %p2248_p11, %p2247_p10 }
  0x34   : > { %p2245_p9 = pneg %p2244_p8 }
  0x36   : > { %p2250_p2 = pnand %p2249_p0, %p2245_p9 }
  0x38   : > { %2253 = shalt.err (!%p2250_p2)
}
  0x39   : > { %s2358_s19 = smov 256   ;;  %s2359_s26 = smov 16  }
  0x3a   : > { %1992 = dma.hbm_to_vmem [thread:$0]  (!%p2517_p5), %s355_s28, 4096, %s357_s18, %s344_s3, %s2358_s19, %s2358_s19, %s2359_s26  }
  0x3b   : > { %368 = sbr.rel (%p2441_p3) target bundleno = 910 (0x38e), region = 56  ;;  %s2534_s14 = sand.u32 (!%p2441_p3), 1, %s2339_s10  }
  0x3c   : > { %s1676_s5 = sshll.u32 (!%p2441_p3), %s2534_s14, 8  ;;  %s371_s6 = scalar_lea.sflag (!%p2441_p3), [#allocation3], %s2534_s14 }
  0x3d   : > { %s2540_s25 = scalar_lea.vmem (!%p2441_p3), [#allocation2], %s1676_s5 }
  0x40   : > { %2314 = dma.done.wait (%p2497_p12), %s371_s6, 4096  }
  0x41   : > { %2316 = vsyncadd (%p2497_p12), %s371_s6, 4294963200 }
  0x42   : > { %2318 = dma.done.wait (%p49_p1), [#allocation6], 3072  }
  0x43   : > { %2320 = vsyncadd (%p49_p1), [#allocation6], 4294964224 }
  0x44   : > { %2322 = dma.done.wait (%p49_p1), [#allocation9], 1040  }
  0x45   : > { %2324 = vsyncadd (%p49_p1), [#allocation9], 4294966256 }
  0x46   : > { %2326 = dma.done.wait (%p49_p1), [#allocation12], 2048  }
  0x47   : > { %2328 = vsyncadd (%p49_p1), [#allocation12], 4294965248  ;;  %v2559_v0 = vld [vmem:[%s2540_s25 + $0x20] sm:$0xff]  ;;  %v2562_v1 = vld [vmem:[%s2540_s25 + $0x28] sm:$0xff]  ;;  %s3033_s24 = scalar_lea.vmem [#allocation13], %s1676_s5  ;;  %s1932_s27 = sshll.u32 %s2436_s16, 8 }
  0x48   : > { %v2565_v2 = vld [vmem:[%s2540_s25] sm:$0xff]  ;;  %v473_v3 = vmul.f32 %v2559_v0, %v2559_v0  ;;  %v474_v4 = vmul.f32 %v2562_v1, %v2562_v1  ;;  %v2572_v5 = vld [vmem:[%s2540_s25 + $0x8] sm:$0xff]  ;;  %v2579_v8 = vld [vmem:[%s2540_s25 + $0x30] sm:$0xff]  ;;  %s1538_s19 = scalar_lea.hbm %s3139_s9, %s1932_s27  ;;  %s1539_s26 = sshll.u32 %s3033_s24, 4  ;;  %s1540_s26 = int_to_ptr.vmem [resolvable:$true] %s1539_s26 }
  0x49   : > { %v469_v6 = vmul.f32 %v2565_v2, %v2565_v2  ;;  %v470_v7 = vmul.f32 %v2572_v5, %v2572_v5  ;;  %v2582_v9 = vld [vmem:[%s2540_s25 + $0x38] sm:$0xff]  ;;  %v2585_v10 = vld [vmem:[%s2540_s25 + $0x40] sm:$0xff]  ;;  %v2588_v12 = vld [vmem:[%s2540_s25 + $0x10] sm:$0xff]  ;;  %v475_v18 = vmul.f32 %v2579_v8, %v2579_v8  ;;  %s1541_s5 = sshll.u32 %s1538_s19, 4  ;;  %s1526_s16 = scalar_lea.sflag [#allocation4], %s2534_s14  ;;  %s1542_s5 = int_to_ptr.hbm [resolvable:$true] %s1541_s5 }
  0x4a   : > { %v507_v11 = vadd.f32 %v474_v4, %v473_v3  ;;  %v2591_v13 = vld [vmem:[%s2540_s25 + $0x18] sm:$0xff]  ;;  %v2594_v14 = vld [vmem:[%s2540_s25 + $0x48] sm:$0xff]  ;;  %v477_v15 = vmul.f32 %v2585_v10, %v2585_v10  ;;  %v476_v19 = vmul.f32 %v2582_v9, %v2582_v9  ;;  %v2605_v20 = vld [vmem:[%s2540_s25 + $0x50] sm:$0xff]  ;;  %v471_v22 = vmul.f32 %v2588_v12, %v2588_v12  ;;  %s2283_s6 = sshra.s32 %s1542_s5, 4  ;;  %s2289_s23 = scalar_lea.hbm %s3139_s9, 1024  ;;  %s2284_s6 = int_to_ptr.hbm [resolvable:$true] %s2283_s6 }
  0x4b   : > { %v501_v16 = vadd.f32 %v470_v7, %v469_v6  ;;  %v478_v17 = vmul.f32 %v2594_v14, %v2594_v14  ;;  %v2608_v21 = vld [vmem:[%s2540_s25 + $0x58] sm:$0xff]  ;;  %v472_v23 = vmul.f32 %v2591_v13, %v2591_v13  ;;  %v479_v25 = vmul.f32 %v2605_v20, %v2605_v20  ;;  %v2619_v28 = vld [vmem:[%s2540_s25 + $0x60] sm:$0xff]  ;;  %v2622_v30 = vld [vmem:[%s2540_s25 + $0x70] sm:$0xff]  ;;  %p2290_p5 = scmp.lt.s32.totalorder %s2284_s6, %s3139_s9 }
  0x4c   : > { %508 = vadd.xlane.f32.xlu1 %v507_v11  ;;  %v480_v26 = vmul.f32 %v2608_v21, %v2608_v21  ;;  %v510_v27 = vadd.f32 %v476_v19, %v475_v18  ;;  %v2625_v31 = vld [vmem:[%s2540_s25 + $0x78] sm:$0xff]  ;;  %v2628_v32 = vld [vmem:[%s2540_s25 + $0x68] sm:$0xff]  ;;  %v2631_v34 = vld [vmem:[%s2540_s25 + $0x80] sm:$0xff]  ;;  %v483_v36 = vmul.f32 %v2622_v30, %v2622_v30  ;;  %v481_v38 = vmul.f32 %v2619_v28, %v2619_v28 }
  0x4d   : > { %502 = vadd.xlane.f32.xlu0 %v501_v16  ;;  %v513_v24 = vadd.f32 %v478_v17, %v477_v15  ;;  %v504_v29 = vadd.f32 %v472_v23, %v471_v22  ;;  %v2634_v35 = vld [vmem:[%s2540_s25 + $0x88] sm:$0xff]  ;;  %v484_v37 = vmul.f32 %v2625_v31, %v2625_v31  ;;  %v482_v39 = vmul.f32 %v2628_v32, %v2628_v32  ;;  %v2649_v44 = vld [vmem:[%s2540_s25 + $0xa0] sm:$0xff]  ;;  %v2655_v46 = vld [vmem:[%s2540_s25 + $0x90] sm:$0xff] }
  0x4e   : > { %v516_v33 = vadd.f32 %v480_v26, %v479_v25  ;;  %v485_v40 = vmul.f32 %v2631_v34, %v2631_v34  ;;  %v486_v41 = vmul.f32 %v2634_v35, %v2634_v35  ;;  %v2652_v45 = vld [vmem:[%s2540_s25 + $0xa8] sm:$0xff]  ;;  %v2658_v47 = vld [vmem:[%s2540_s25 + $0x98] sm:$0xff]  ;;  %v2661_v49 = vld [vmem:[%s2540_s25 + $0xb0] sm:$0xff]  ;;  %v489_v51 = vmul.f32 %v2649_v44, %v2649_v44 }
  0x4f   : > { %514 = vadd.xlane.f32.xlu2 %v513_v24  ;;  %v522_v42 = vadd.f32 %v484_v37, %v483_v36  ;;  %v519_v43 = vadd.f32 %v482_v39, %v481_v38  ;;  %v2664_v50 = vld [vmem:[%s2540_s25 + $0xb8] sm:$0xff]  ;;  %v490_v52 = vmul.f32 %v2652_v45, %v2652_v45  ;;  %v487_v53 = vmul.f32 %v2655_v46, %v2655_v46  ;;  %v2679_v59 = vld [vmem:[%s2540_s25 + $0xd0] sm:$0xff]  ;;  %v2685_v61 = vld [vmem:[%s2540_s25 + $0xc0] sm:$0xff] }
  0x50   : > { %v525_v48 = vadd.f32 %v486_v41, %v485_v40  ;;  %v488_v54 = vmul.f32 %v2658_v47, %v2658_v47  ;;  %v491_v55 = vmul.f32 %v2661_v49, %v2661_v49  ;;  %v492_v56 = vmul.f32 %v2664_v50, %v2664_v50  ;;  %v2682_v60 = vld [vmem:[%s2540_s25 + $0xd8] sm:$0xff]  ;;  %v2688_v62 = vld [vmem:[%s2540_s25 + $0xc8] sm:$0xff]  ;;  %v2695_v6 = vld [vmem:[%s2540_s25 + $0xe0] sm:$0xff] }
  0x51   : > { %v531_v57 = vadd.f32 %v490_v52, %v489_v51  ;;  %v495_v3 = vmul.f32 %v2679_v59, %v2679_v59  ;;  %v496_v4 = vmul.f32 %v2682_v60, %v2682_v60  ;;  %v2698_v7 = vld [vmem:[%s2540_s25 + $0xe8] sm:$0xff]  ;;  %v493_v11 = vmul.f32 %v2685_v61, %v2685_v61  ;;  %v2709_v22 = vld [vmem:[%s2540_s25 + $0xf0] sm:$0xff]  ;;  %v2712_v23 = vld [vmem:[%s2540_s25 + $0xf8] sm:$0xff]  ;;  %s2285_s25 = scalar_lea.hbm %s2284_s6, 256 }
  0x52   : > { %v528_v58 = vadd.f32 %v488_v54, %v487_v53  ;;  %v534_v63 = vadd.f32 %v492_v56, %v491_v55  ;;  %v494_v15 = vmul.f32 %v2688_v62, %v2688_v62  ;;  %v497_v16 = vmul.f32 %v2695_v6, %v2695_v6  ;;  %v1889_v36 = vld [vmem:[#allocation5 + $0x30] sm:$0xff]  ;;  %v1888_v38 = vld [vmem:[#allocation5 + $0x28] sm:$0xff]  ;;  %v1887_v40 = vld [vmem:[#allocation5 + $0x20] sm:$0xff]  ;;  %p2286_p1 = scmp.ne.s32.totalorder %s2284_s6, %s2285_s25  ;;  %p2291_p6 = scmp.lt.s32.totalorder %s2289_s23, %s2285_s25 }
  0x53   : > { %v498_v17 = vmul.f32 %v2698_v7, %v2698_v7  ;;  %v540_v18 = vadd.f32 %v496_v4, %v495_v3  ;;  %v499_v25 = vmul.f32 %v2709_v22, %v2709_v22  ;;  %v500_v26 = vmul.f32 %v2712_v23, %v2712_v23  ;;  %v1897_v37 = vld [vmem:[#allocation5 + $0x70] sm:$0xff]  ;;  %v1896_v39 = vld [vmem:[#allocation5 + $0x68] sm:$0xff]  ;;  %v1895_v41 = vld [vmem:[#allocation5 + $0x60] sm:$0xff] }
  0x54   : > { %511 = vadd.xlane.f32.xlu1 %v510_v27  ;;  %v537_v19 = vadd.f32 %v494_v15, %v493_v11  ;;  %v1893_v51 = vld [vmem:[#allocation5 + $0x50] sm:$0xff]  ;;  %v1884_v52 = vld [vmem:[#allocation5 + $0x8] sm:$0xff]  ;;  %v1883_v54 = vld [vmem:[#allocation5] sm:$0xff]  ;;  %p2287_p3 = pnand %p2286_p1, %p2501_p13  ;;  %p2292_p7 = por %p2291_p6, %p2290_p5 }
  0x55   : > { %505 = vadd.xlane.f32.xlu0 %v504_v29  ;;  %v543_v24 = vadd.f32 %v498_v17, %v497_v16  ;;  %v546_v27 = vadd.f32 %v500_v26, %v499_v25  ;;  %v1890_v29 = vld [vmem:[#allocation5 + $0x38] sm:$0xff]  ;;  %v1892_v53 = vld [vmem:[#allocation5 + $0x48] sm:$0xff]  ;;  %v1891_v55 = vld [vmem:[#allocation5 + $0x40] sm:$0xff] }
  0x56   : > { %905 = vmatpush.bf16.msra.mxu0 %v1890_v29  ;;  %1933 = vmatpush.bf16.msra.mxu2 %v1890_v29  ;;  %p2288_p12 = pneg %p2287_p3 }
  0x57   : > { %517 = vadd.xlane.f32.xlu2 %v516_v33  ;;  %v1898_v33 = vld [vmem:[#allocation5 + $0x78] sm:$0xff] }
  0x58   : > { %954 = vmatpush.bf16.msra.mxu1 %v1898_v33  ;;  %1941 = vmatpush.bf16.msra.mxu3 %v1898_v33  ;;  %p2293_p8 = pnand %p2292_p7, %p2288_p12 }
  0x5a   : > { %906 = vmatpush.bf16.msra.mxu0 %v1889_v36  ;;  %1934 = vmatpush.bf16.msra.mxu2 %v1889_v36 }
  0x5c   : > { %523 = vadd.xlane.f32.xlu1 %v522_v42  ;;  %955 = vmatpush.bf16.msra.mxu1 %v1897_v37  ;;  %v1886_v42 = vld [vmem:[#allocation5 + $0x18] sm:$0xff] }
  0x5d   : > { %520 = vadd.xlane.f32.xlu0 %v519_v43  ;;  %1942 = vmatpush.bf16.msra.mxu3 %v1897_v37  ;;  %v1894_v43 = vld [vmem:[#allocation5 + $0x58] sm:$0xff] }
  0x5e   : > { %907 = vmatpush.bf16.msra.mxu0 %v1888_v38  ;;  %1935 = vmatpush.bf16.msra.mxu2 %v1888_v38 }
  0x5f   : > { %526 = vadd.xlane.f32.xlu2 %v525_v48  ;;  %v1885_v48 = vld [vmem:[#allocation5 + $0x10] sm:$0xff] }
  0x60   : > { %956 = vmatpush.bf16.msra.mxu1 %v1896_v39 }
  0x61   : > { %1943 = vmatpush.bf16.msra.mxu3 %v1896_v39 }
  0x62   : > { %908 = vmatpush.bf16.msra.mxu0 %v1887_v40  ;;  %1936 = vmatpush.bf16.msra.mxu2 %v1887_v40 }
  0x64   : > { %532 = vadd.xlane.f32.xlu1 %v531_v57  ;;  %957 = vmatpush.bf16.msra.mxu1 %v1895_v41 }
  0x65   : > { %529 = vadd.xlane.f32.xlu0 %v528_v58  ;;  %1944 = vmatpush.bf16.msra.mxu3 %v1895_v41 }
  0x66   : > { %909 = vmatpush.bf16.msra.mxu0 %v1886_v42  ;;  %1937 = vmatpush.bf16.msra.mxu2 %v1886_v42 }
  0x67   : > { %535 = vadd.xlane.f32.xlu2 %v534_v63 }
  0x68   : > { %958 = vmatpush.bf16.msra.mxu1 %v1894_v43 }
  0x69   : > { %1945 = vmatpush.bf16.msra.mxu3 %v1894_v43 }
  0x6a   : > { %910 = vmatpush.bf16.msra.mxu0 %v1885_v48  ;;  %1938 = vmatpush.bf16.msra.mxu2 %v1885_v48 }
  0x6c   : > { %541 = vadd.xlane.f32.xlu1 %v540_v18  ;;  %959 = vmatpush.bf16.msra.mxu1 %v1893_v51 }
  0x6d   : > { %538 = vadd.xlane.f32.xlu0 %v537_v19  ;;  %1946 = vmatpush.bf16.msra.mxu3 %v1893_v51 }
  0x6e   : > { %911 = vmatpush.bf16.msra.mxu0 %v1884_v52  ;;  %1939 = vmatpush.bf16.msra.mxu2 %v1884_v52 }
  0x6f   : > { %544 = vadd.xlane.f32.xlu2 %v543_v24 }
  0x70   : > { %960 = vmatpush.bf16.msra.mxu1 %v1892_v53 }
  0x71   : > { %1947 = vmatpush.bf16.msra.mxu3 %v1892_v53 }
  0x72   : > { %912 = vmatpush.bf16.msra.mxu0 %v1883_v54  ;;  %1940 = vmatpush.bf16.msra.mxu2 %v1883_v54 }
  0x74   : > { %961 = vmatpush.bf16.msra.mxu1 %v1891_v55 }
  0x75   : > { %547 = vadd.xlane.f32.xlu0 %v546_v27  ;;  %1948 = vmatpush.bf16.msra.mxu3 %v1891_v55 }
  0xbf   : > { %v509_v56 = vpop.xlane.xlu1 %508 }
  0xc0   : > { %v503_v57 = vpop.xlane.xlu0 %502  ;;  %v2718_v3 = vmax.f32 %v509_v56, 1e-24 }
  0xc1   : > { %v549_v58 = vmax.f32 %v503_v57, 1e-24 }
  0xc2   : > { %v515_v63 = vpop.xlane.xlu2 %514  ;;  %vm591_vm11 = vweird.f32 %v2718_v3 }
  0xc3   : > { %2057 = vrsqrt.f32 %v549_v58  ;;  %v2728_v29 = vmax.f32 %v515_v63, 1e-24  ;;  %vm571_vm1 = vweird.f32 %v549_v58 }
  0xc4   : > { %2059 = vrsqrt.f32 %v2718_v3 }
  0xc7   : > { %v512_v4 = vpop.xlane.xlu1 %511 }
  0xc8   : > { %v2720_v11 = vmax.f32 %v512_v4, 1e-24  ;;  %v506_v15 = vpop.xlane.xlu0 %505 }
  0xc9   : > { %v2058_v16 = vpop.eup %2057  ;;  %v550_v17 = vmax.f32 %v506_v15, 1e-24 }
  0xca   : > { %v566_v18 = vmul.f32 %v2058_v16, %v549_v58  ;;  %2061 = vrsqrt.f32 %v2720_v11  ;;  %v518_v19 = vpop.xlane.xlu2 %517  ;;  %v2724_v26 = vpop.eup %2059  ;;  %vm572_vm0 = vweird.f32 %v2058_v16  ;;  %vm601_vm6 = vweird.f32 %v2720_v11 }
  0xcb   : > { %2063 = vrsqrt.f32 %v550_v17  ;;  %v586_v42 = vmul.f32 %v2724_v26, %v2718_v3  ;;  %v2739_v51 = vmax.f32 %v518_v19, 1e-24  ;;  %vm573_vm2 = vmor %vm571_vm1, %vm572_vm0  ;;  %vm581_vm4 = vweird.f32 %v550_v17 }
  0xcc   : > { %v567_v24 = vmul.f32 %v2058_v16, %v566_v18  ;;  %2065 = vrsqrt.f32 %v2728_v29  ;;  %vm592_vm12 = vweird.f32 %v2724_v26 }
  0xcd   : > { %v587_v55 = vmul.f32 %v2724_v26, %v586_v42  ;;  %vm593_vm15 = vmor %vm591_vm11, %vm592_vm12 }
  0xce   : > { %v568_v25 = vmul.f32 0.5, %v567_v24 }
  0xcf   : > { %v2732_v41 = vpop.xlane.xlu1 %523 }
  0xd0   : > { %v2726_v27 = vpop.eup %2061  ;;  %v521_v33 = vpop.xlane.xlu0 %520  ;;  %v569_v37 = vsub.f32 1.5, %v568_v25 }
  0xd1   : > { %v2064_v36 = vpop.eup %2063  ;;  %v596_v38 = vmul.f32 %v2726_v27, %v2720_v11  ;;  %vm602_vm7 = vweird.f32 %v2726_v27  ;;  %v2789_v11 = vmax.f32 %v2732_v41, 1e-24 }
  0xd2   : > { %v576_v39 = vmul.f32 %v2064_v36, %v550_v17  ;;  %v527_v40 = vpop.xlane.xlu2 %526  ;;  %v570_v53 = vmul.f32 %v2058_v16, %v569_v37  ;;  %vm582_vm3 = vweird.f32 %v2064_v36  ;;  %v2747_v18 = vpop.eup %2065  ;;  %vm2778_vm8 = vmor %vm601_vm6, %vm602_vm7 }
  0xd3   : > { %v2736_v43 = vmax.f32 %v527_v40, 1e-24  ;;  %v597_v52 = vmul.f32 %v2726_v27, %v596_v38  ;;  %v588_v38 = vmul.f32 0.5, %v587_v55  ;;  %vm583_vm5 = vmor %vm581_vm4, %vm582_vm3  ;;  %vm612_vm3 = vweird.f32 %v2747_v18 }
  0xd4   : > { %v577_v48 = vmul.f32 %v2064_v36, %v576_v39  ;;  %v574_v4 = vsel %vm573_vm2, %v2058_v16, %v570_v53  ;;  %vm611_vm2 = vweird.f32 %v2728_v29 }
  0xd5   : > { %2067 = vrsqrt.f32 %v2736_v43  ;;  %v598_v63 = vmul.f32 0.5, %v597_v52  ;;  %v725_v40 = vmul.f32 %v574_v4, %v2565_v2  ;;  %v726_v16 = vmul.f32 %v574_v4, %v2572_v5 }
  0xd6   : > { %v578_v54 = vmul.f32 0.5, %v577_v48  ;;  %2069 = vrsqrt.f32 %v2739_v51  ;;  %vm651_vm9 = vweird.f32 %v2736_v43 }
  0xd7   : > { %v533_v25 = vpop.xlane.xlu1 %532  ;;  %v599_v17 = vsub.f32 1.5, %v598_v63 }
  0xd8   : > { %v579_v56 = vsub.f32 1.5, %v578_v54  ;;  %v530_v57 = vpop.xlane.xlu0 %529  ;;  %v2760_v53 = vmax.f32 %v533_v25, 1e-24 }
  0xd9   : > { %v2745_v15 = vmax.f32 %v530_v57, 1e-24  ;;  %v600_v4 = vmul.f32 %v2726_v27, %v599_v17 }
  0xda   : > { %v580_v19 = vmul.f32 %v2064_v36, %v579_v56  ;;  %v536_v24 = vpop.xlane.xlu2 %535  ;;  %v2770_v56 = vmax.f32 %v521_v33, 1e-24  ;;  %vm671_vm6 = vweird.f32 %v2760_v53 }
  0xdb   : > { %v2749_v37 = vpop.eup %2067  ;;  %2071 = vrsqrt.f32 %v2745_v15  ;;  %v2752_v58 = vmax.f32 %v536_v24, 1e-24  ;;  %vm661_vm14 = vweird.f32 %v2745_v15  ;;  %v604_v41 = vsel %vm2778_vm8, %v2726_v27, %v600_v4  ;;  %vm2854_vm8 = vmor %vm611_vm2, %vm612_vm3 }
  0xdc   : > { %v584_v39 = vsel %vm583_vm5, %v2064_v36, %v580_v19  ;;  %v646_v42 = vmul.f32 %v2749_v37, %v2736_v43  ;;  %v2762_v54 = vpop.eup %2069  ;;  %v606_v36 = vmul.f32 %v2747_v18, %v2728_v29  ;;  %vm652_vm10 = vweird.f32 %v2749_v37 }
  0xdd   : > { %v727_v48 = vmul.f32 %v584_v39, %v2588_v12  ;;  %v728_v52 = vmul.f32 %v584_v39, %v2591_v13  ;;  %2073 = vrsqrt.f32 %v2752_v58  ;;  %v589_v12 = vsub.f32 1.5, %v588_v38  ;;  %vm653_vm13 = vmor %vm651_vm9, %vm652_vm10 }
  0xde   : > { %v647_v2 = vmul.f32 %v2749_v37, %v646_v42  ;;  %v616_v63 = vmul.f32 %v2762_v54, %v2739_v51  ;;  %2075 = vrsqrt.f32 %v2760_v53  ;;  %v607_v38 = vmul.f32 %v2747_v18, %v606_v36 }
  0xdf   : > { %v757_v5 = vpack.c.bf16 %v727_v48, %v725_v40  ;;  %v758_v55 = vpack.c.bf16 %v728_v52, %v726_v16  ;;  %v542_v25 = vpop.xlane.xlu1 %541  ;;  %2077 = vrsqrt.f32 %v2770_v56  ;;  %v590_v16 = vmul.f32 %v2724_v26, %v589_v12 }
  0xe0   : > { %v648_v13 = vmul.f32 0.5, %v647_v2  ;;  %v539_v39 = vpop.xlane.xlu0 %538  ;;  %v617_v48 = vmul.f32 %v2762_v54, %v616_v63  ;;  %v2803_v52 = vmax.f32 %v542_v25, 1e-24  ;;  %2079 = vrsqrt.f32 %v2789_v11 }
  0xe1   : > { %v2072_v57 = vpop.eup %2071  ;;  %913 = vmatmul.bf16.vlgmr.msra.gmra.mxu0 %v757_v5  ;;  %962 = vmatmul.bf16.vlgmr.msra.gmra.mxu1 %v758_v55  ;;  %v2809_v5 = vmax.f32 %v539_v39, 1e-24  ;;  %v608_v55 = vmul.f32 0.5, %v607_v38  ;;  %v594_v4 = vsel %vm593_vm15, %v2724_v26, %v590_v16  ;;  %v731_v19 = vmul.f32 %v604_v41, %v2579_v8 }
  0xe2   : > { %v649_v24 = vsub.f32 1.5, %v648_v13  ;;  %v656_v33 = vmul.f32 %v2072_v57, %v2745_v15  ;;  %vm662_vm0 = vweird.f32 %v2072_v57  ;;  %v618_v63 = vmul.f32 0.5, %v617_v48 }
  0xe3   : > { %v2794_v17 = vpop.eup %2073  ;;  %vm663_vm1 = vmor %vm661_vm14, %vm662_vm0  ;;  %2081 = vrsqrt.f32 %v2803_v52  ;;  %v729_v8 = vmul.f32 %v594_v4, %v2559_v0  ;;  %vm681_vm4 = vweird.f32 %v2752_v58  ;;  %vm621_vm9 = vweird.f32 %v2739_v51 }
  0xe4   : > { %v657_v40 = vmul.f32 %v2072_v57, %v656_v33  ;;  %v650_v42 = vmul.f32 %v2749_v37, %v649_v24  ;;  %v676_v2 = vmul.f32 %v2794_v17, %v2752_v58  ;;  %v2811_v43 = vpop.eup %2075  ;;  %2083 = vrsqrt.f32 %v2809_v5 }
  0xe5   : > { %v666_v13 = vmul.f32 %v2811_v43, %v2760_v53  ;;  %v2823_v24 = vpop.eup %2077  ;;  %vm682_vm5 = vweird.f32 %v2794_v17  ;;  %vm672_vm7 = vweird.f32 %v2811_v43  ;;  %vm622_vm10 = vweird.f32 %v2762_v54 }
  0xe6   : > { %v658_v36 = vmul.f32 0.5, %v657_v40  ;;  %v677_v27 = vmul.f32 %v2794_v17, %v676_v2  ;;  %v654_v3 = vsel %vm653_vm13, %v2749_v37, %v650_v42  ;;  %v732_v37 = vmul.f32 %v604_v41, %v2582_v9  ;;  %v2832_v16 = vpop.eup %2079  ;;  %vm683_vm11 = vmor %vm681_vm4, %vm682_vm5 }
  0xe7   : > { %v667_v25 = vmul.f32 %v2811_v43, %v666_v13  ;;  %v741_v39 = vmul.f32 %v654_v3, %v2631_v34  ;;  %v742_v15 = vmul.f32 %v654_v3, %v2634_v35  ;;  %v730_v42 = vmul.f32 %v594_v4, %v2562_v1  ;;  %v1906_v4 = vld [vmem:[#allocation7 + $0x38] sm:$0xff]  ;;  %vm673_vm12 = vmor %vm671_vm6, %vm672_vm7 }
  0xe8   : > { %v659_v12 = vsub.f32 1.5, %v658_v36  ;;  %v678_v33 = vmul.f32 0.5, %v677_v27  ;;  %v609_v41 = vsub.f32 1.5, %v608_v55  ;;  %v619_v34 = vsub.f32 1.5, %v618_v63  ;;  %v545_v63 = vpop.xlane.xlu2 %544  ;;  %1095 = vmatpush.bf16.msrb.mxu2 %v1906_v4  ;;  %vm623_vm13 = vmor %vm621_vm9, %vm622_vm10 }
  0xe9   : > { %v668_v26 = vmul.f32 0.5, %v667_v25  ;;  %v759_v36 = vpack.c.bf16 %v731_v19, %v729_v8  ;;  %v2838_v2 = vpop.eup %2081  ;;  %v626_v3 = vmul.f32 %v2823_v24, %v2770_v56  ;;  %v636_v1 = vmul.f32 %v2832_v16, %v2789_v11  ;;  %v548_v25 = vpop.xlane.xlu0 %547 }
  0xea   : > { %v660_v38 = vmul.f32 %v2072_v57, %v659_v12  ;;  %v679_v35 = vsub.f32 1.5, %v678_v33  ;;  %v760_v12 = vpack.c.bf16 %v732_v37, %v730_v42  ;;  %v2840_v13 = vpop.eup %2083  ;;  %v696_v29 = vmul.f32 %v2838_v2, %v2803_v52 }
  0xeb   : > { %v669_v0 = vsub.f32 1.5, %v668_v26  ;;  %v686_v19 = vmul.f32 %v2840_v13, %v2809_v5  ;;  %v637_v37 = vmul.f32 %v2832_v16, %v636_v1  ;;  %v620_v58 = vmul.f32 %v2762_v54, %v619_v34 }
  0xec   : > { %v664_v40 = vsel %vm663_vm1, %v2072_v57, %v660_v38  ;;  %v680_v55 = vmul.f32 %v2794_v17, %v679_v35  ;;  %v627_v38 = vmul.f32 %v2823_v24, %v626_v3  ;;  %v2886_v26 = vmax.f32 %v548_v25, 1e-24 }
  0xed   : > { %v743_v48 = vmul.f32 %v664_v40, %v2655_v46  ;;  %v744_v9 = vmul.f32 %v664_v40, %v2658_v47  ;;  %v610_v47 = vmul.f32 %v2747_v18, %v609_v41  ;;  %v670_v33 = vmul.f32 %v2811_v43, %v669_v0 }
  0xee   : > { %v684_v8 = vsel %vm683_vm11, %v2794_v17, %v680_v55  ;;  %v697_v53 = vmul.f32 %v2838_v2, %v696_v29  ;;  %v687_v40 = vmul.f32 %v2840_v13, %v686_v19  ;;  %v624_v51 = vsel %vm623_vm13, %v2762_v54, %v620_v58 }
  0xef   : > { %v765_v27 = vpack.c.bf16 %v743_v48, %v741_v39  ;;  %v766_v57 = vpack.c.bf16 %v744_v9, %v742_v15  ;;  %v2880_v39 = vmax.f32 %v545_v63, 1e-24  ;;  %v614_v15 = vsel %vm2854_vm8, %v2747_v18, %v610_v47 }
  0xf0   : > { %v674_v42 = vsel %vm673_vm12, %v2811_v43, %v670_v33  ;;  %v628_v48 = vmul.f32 0.5, %v627_v38  ;;  %v638_v9 = vmul.f32 0.5, %v637_v37  ;;  %v733_v41 = vmul.f32 %v614_v15, %v2585_v10  ;;  %v1903_v38 = vld [vmem:[#allocation7 + $0x20] sm:$0xff] }
  0xf1   : > { %918 = vmatmul.bf16.gmra.mxu0 %v759_v36  ;;  %967 = vmatmul.bf16.gmra.mxu1 %v760_v12  ;;  %v734_v34 = vmul.f32 %v614_v15, %v2594_v14  ;;  %v747_v18 = vmul.f32 %v684_v8, %v2661_v49  ;;  %2085 = vrsqrt.f32 %v2880_v39  ;;  %v745_v17 = vmul.f32 %v674_v42, %v2649_v44 }
  0xf2   : > { %933 = vmatmul.bf16.vlgmr.msra.gmra.mxu2 %v765_v27  ;;  %982 = vmatmul.bf16.vlgmr.msra.gmra.mxu3 %v766_v57  ;;  %v746_v36 = vmul.f32 %v674_v42, %v2652_v45  ;;  %v748_v35 = vmul.f32 %v684_v8, %v2664_v50  ;;  %2087 = vrsqrt.f32 %v2886_v26  ;;  %v735_v43 = vmul.f32 %v624_v51, %v2605_v20  ;;  %v1902_v42 = vld [vmem:[#allocation7 + $0x18] sm:$0xff] }
  0xf3   : > { %v736_v54 = vmul.f32 %v624_v51, %v2608_v21  ;;  %v698_v12 = vmul.f32 0.5, %v697_v53  ;;  %v688_v10 = vmul.f32 0.5, %v687_v40  ;;  %vm631_vm14 = vweird.f32 %v2770_v56  ;;  %v1905_v56 = vld [vmem:[#allocation7 + $0x30] sm:$0xff] }
  0xf4   : > { %vm632_vm15 = vweird.f32 %v2823_v24  ;;  %vm641_vm0 = vweird.f32 %v2789_v11  ;;  %vm642_vm1 = vweird.f32 %v2832_v16  ;;  %v629_v14 = vsub.f32 1.5, %v628_v48  ;;  %1096 = vmatpush.bf16.msrb.mxu2 %v1905_v56  ;;  %v1904_v11 = vld [vmem:[#allocation7 + $0x28] sm:$0xff] }
  0xf5   : > { %v639_v44 = vsub.f32 1.5, %v638_v9  ;;  %v767_v45 = vpack.c.bf16 %v747_v18, %v745_v17  ;;  %v768_v49 = vpack.c.bf16 %v748_v35, %v746_v36  ;;  %v761_v0 = vpack.c.bf16 %v735_v43, %v733_v41  ;;  %vm2916_vm4 = vmor %vm631_vm14, %vm632_vm15  ;;  %v1900_v36 = vld [vmem:[#allocation7 + $0x8] sm:$0xff]  ;;  %v1899_v35 = vld [vmem:[#allocation7] sm:$0xff] }
  0xf6   : > { %v762_v20 = vpack.c.bf16 %v736_v54, %v734_v34  ;;  %v699_v27 = vsub.f32 1.5, %v698_v12  ;;  %v689_v21 = vsub.f32 1.5, %v688_v10  ;;  %vm701_vm2 = vweird.f32 %v2803_v52  ;;  %vm643_vm7 = vmor %vm641_vm0, %vm642_vm1 }
  0xf7   : > { %v2906_v50 = vpop.eup %2085  ;;  %vm702_vm3 = vweird.f32 %v2838_v2  ;;  %vm691_vm5 = vweird.f32 %v2809_v5  ;;  %vm692_vm6 = vweird.f32 %v2840_v13  ;;  %v630_v52 = vmul.f32 %v2823_v24, %v629_v14 }
  0xf8   : > { %v2908_v57 = vpop.eup %2087  ;;  %v640_v1 = vmul.f32 %v2832_v16, %v639_v44  ;;  %vm703_vm8 = vmor %vm701_vm2, %vm702_vm3  ;;  %v706_v46 = vmul.f32 %v2906_v50, %v2880_v39  ;;  %v690_v47 = vmul.f32 %v2840_v13, %v689_v21  ;;  %v700_v55 = vmul.f32 %v2838_v2, %v699_v27  ;;  %1097 = vmatpush.bf16.msrb.mxu2 %v1904_v11 }
  0xf9   : > { %v716_v5 = vmul.f32 %v2908_v57, %v2886_v26  ;;  %vm693_vm9 = vmor %vm691_vm5, %vm692_vm6  ;;  %v634_v63 = vsel %vm2916_vm4, %v2823_v24, %v630_v52  ;;  %vm711_vm10 = vweird.f32 %v2880_v39  ;;  %vm712_vm11 = vweird.f32 %v2906_v50 }
  0xfa   : > { %v644_v4 = vsel %vm643_vm7, %v2832_v16, %v640_v1  ;;  %v707_v29 = vmul.f32 %v2906_v50, %v706_v46  ;;  %v694_v33 = vsel %vm693_vm9, %v2840_v13, %v690_v47  ;;  %v704_v25 = vsel %vm703_vm8, %v2838_v2, %v700_v55  ;;  %vm713_vm14 = vmor %vm711_vm10, %vm712_vm11 }
  0xfb   : > { %v717_v19 = vmul.f32 %v2908_v57, %v716_v5  ;;  %v737_v37 = vmul.f32 %v634_v63, %v2619_v28  ;;  %v739_v58 = vmul.f32 %v644_v4, %v2622_v30  ;;  %v749_v15 = vmul.f32 %v694_v33, %v2685_v61 }
  0xfc   : > { %v751_v24 = vmul.f32 %v704_v25, %v2679_v59  ;;  %v750_v16 = vmul.f32 %v694_v33, %v2688_v62  ;;  %v752_v8 = vmul.f32 %v704_v25, %v2682_v60  ;;  %v738_v53 = vmul.f32 %v634_v63, %v2628_v32  ;;  %1098 = vmatpush.bf16.msrb.mxu2 %v1903_v38  ;;  %v1901_v59 = vld [vmem:[#allocation7 + $0x10] sm:$0xff] }
  0xfd   : > { %v740_v13 = vmul.f32 %v644_v4, %v2625_v31  ;;  %v708_v40 = vmul.f32 0.5, %v707_v29  ;;  %v718_v2 = vmul.f32 0.5, %v717_v19  ;;  %v763_v9 = vpack.c.bf16 %v739_v58, %v737_v37 }
  0xfe   : > { %v769_v48 = vpack.c.bf16 %v751_v24, %v749_v15  ;;  %v770_v28 = vpack.c.bf16 %v752_v8, %v750_v16  ;;  %vm721_vm12 = vweird.f32 %v2886_v26  ;;  %vm722_vm13 = vweird.f32 %v2908_v57 }
  0xff   : > { %v764_v30 = vpack.c.bf16 %v740_v13, %v738_v53  ;;  %v709_v51 = vsub.f32 1.5, %v708_v40  ;;  %v719_v61 = vsub.f32 1.5, %v718_v2  ;;  %vm723_vm15 = vmor %vm721_vm12, %vm722_vm13 }
 0x100   : > { %1099 = vmatpush.bf16.msrb.mxu2 %v1902_v42 }
 0x101   : > { %923 = vmatmul.bf16.gmra.mxu0 %v761_v0  ;;  %972 = vmatmul.bf16.gmra.mxu1 %v762_v20  ;;  %v710_v31 = vmul.f32 %v2906_v50, %v709_v51  ;;  %v720_v32 = vmul.f32 %v2908_v57, %v719_v61  ;;  %v1914_v61 = vld [vmem:[#allocation8 + $0x38] sm:$0xff] }
 0x102   : > { %938 = vmatmul.bf16.gmra.mxu2 %v767_v45  ;;  %987 = vmatmul.bf16.gmra.mxu3 %v768_v49 }
 0x103   : > { %v714_v60 = vsel %vm713_vm14, %v2906_v50, %v710_v31  ;;  %v724_v62 = vsel %vm723_vm15, %v2908_v57, %v720_v32  ;;  %1220 = vmatpush.bf16.msrb.mxu3 %v1914_v61 }
 0x104   : > { %1100 = vmatpush.bf16.msrb.mxu2 %v1901_v59  ;;  %v753_v39 = vmul.f32 %v714_v60, %v2695_v6  ;;  %v755_v41 = vmul.f32 %v724_v62, %v2709_v22  ;;  %v754_v26 = vmul.f32 %v714_v60, %v2698_v7  ;;  %v756_v34 = vmul.f32 %v724_v62, %v2712_v23  ;;  %v2965_v6 = vld [vmem:[%s3132_s2] ss:$0 sm:$0xff]  ;;  %v1913_v60 = vld [vmem:[#allocation8 + $0x30] sm:$0xff] }
 0x106   : > { %v771_v18 = vpack.c.bf16 %v755_v41, %v753_v39  ;;  %v772_v17 = vpack.c.bf16 %v756_v34, %v754_v26 }
 0x107   : > { %1221 = vmatpush.bf16.msrb.mxu3 %v1913_v60  ;;  %v1869_v60 = vld [vmem:[#allocation11 + $0x70] sm:$0xf] }
 0x108   : > { %1101 = vmatpush.bf16.msrb.mxu2 %v1900_v36  ;;  %v1912_v36 = vld [vmem:[#allocation8 + $0x28] sm:$0xff] }
 0x10b   : > { %1222 = vmatpush.bf16.msrb.mxu3 %v1912_v36  ;;  %v1928_v36 = vld [vmem:[#allocation11 + $0x64] sm:$0xf0] }
 0x10c   : > { %1102 = vmatpush.bf16.msrb.mxu2 %v1899_v35 }
 0x111   : > { %928 = vmatmul.bf16.gmra.mxu0 %v763_v9  ;;  %977 = vmatmul.bf16.gmra.mxu1 %v764_v30 }
 0x112   : > { %943 = vmatmul.bf16.gmra.mxu2 %v769_v48  ;;  %992 = vmatmul.bf16.gmra.mxu3 %v770_v28 }
 0x122   : > { %948 = vmatmul.bf16.gmra.mxu2 %v771_v18  ;;  %997 = vmatmul.bf16.gmra.mxu3 %v772_v17 }
 0x15e   : > { %v914_v43 = vpop.f32.mrf.mxu0  ;;  %v963_v54 = vpop.f32.mrf.mxu1 }
 0x15f   : > { %v915_v22 = vadd.f32 %v2965_v6, %v914_v43 }
 0x161   : > { %v964_v23 = vadd.f32 %v963_v54, %v915_v22  ;;  %v1911_v22 = vld [vmem:[#allocation8 + $0x20] sm:$0xff] }
 0x162   : > { %1223 = vmatpush.bf16.msrb.mxu3 %v1911_v22 }
 0x163   : > { %v1003_v44 = vmax.f32 %v964_v23, 0.0 }
 0x166   : > { %v916_v7 = vpop.f32.mrf.mxu0  ;;  %v965_v12 = vpop.f32.mrf.mxu1 }
 0x167   : > { %v917_v10 = vadd.f32 %v2965_v6, %v916_v7 }
 0x169   : > { %v966_v14 = vadd.f32 %v965_v12, %v917_v10 }
 0x16b   : > { %v1004_v45 = vmax.f32 %v966_v14, 0.0 }
 0x16d   : > { %v1019_v49 = vpack.c.bf16 %v1004_v45, %v1003_v44 }
 0x16e   : > { %v919_v50 = vpop.f32.mrf.mxu0  ;;  %v968_v0 = vpop.f32.mrf.mxu1 }
 0x16f   : > { %1103 = vmatmul.bf16.vlgmr.msrb.gmra.mxu2 %v1019_v49  ;;  %v920_v20 = vadd.f32 %v2965_v6, %v919_v50  ;;  %v1910_v50 = vld [vmem:[#allocation8 + $0x18] sm:$0xff] }
 0x170   : > { %1224 = vmatpush.bf16.msrb.mxu3 %v1910_v50  ;;  %v1855_v50 = vld [vmem:[#allocation11 + $0x58] sm:$0xf0] }
 0x171   : > { %v969_v57 = vadd.f32 %v968_v0, %v920_v20 }
 0x173   : > { %v1005_v1 = vmax.f32 %v969_v57, 0.0 }
 0x175   : > { %v934_v19 = vpop.f32.mrf.mxu2  ;;  %v983_v37 = vpop.f32.mrf.mxu3 }
 0x176   : > { %v921_v27 = vpop.f32.mrf.mxu0  ;;  %v970_v21 = vpop.f32.mrf.mxu1  ;;  %v935_v31 = vadd.f32 %v2965_v6, %v934_v19 }
 0x177   : > { %v922_v3 = vadd.f32 %v2965_v6, %v921_v27  ;;  %v1909_v27 = vld [vmem:[#allocation8 + $0x10] sm:$0xff] }
 0x178   : > { %v984_v62 = vadd.f32 %v983_v37, %v935_v31  ;;  %1225 = vmatpush.bf16.msrb.mxu3 %v1909_v27  ;;  %v1845_v27 = vld [vmem:[#allocation11 + $0x40] sm:$0xf] }
 0x179   : > { %v971_v52 = vadd.f32 %v970_v21, %v922_v3 }
 0x17a   : > { %v1011_v26 = vmax.f32 %v984_v62, 0.0  ;;  %v1930_v62 = vld [vmem:[#allocation11 + $0x74] sm:$0xf0] }
 0x17b   : > { %v1006_v56 = vmax.f32 %v971_v52, 0.0  ;;  %v1908_v52 = vld [vmem:[#allocation8 + $0x8] sm:$0xff] }
 0x17c   : > { %1226 = vmatpush.bf16.msrb.mxu3 %v1908_v52  ;;  %v1847_v52 = vld [vmem:[#allocation11 + $0x48] sm:$0xf0] }
 0x17d   : > { %v1020_v46 = vpack.c.bf16 %v1006_v56, %v1005_v1  ;;  %v936_v16 = vpop.f32.mrf.mxu2  ;;  %v985_v53 = vpop.f32.mrf.mxu3 }
 0x17e   : > { %v924_v5 = vpop.f32.mrf.mxu0  ;;  %v973_v47 = vpop.f32.mrf.mxu1  ;;  %v937_v32 = vadd.f32 %v2965_v6, %v936_v16 }
 0x17f   : > { %1108 = vmatmul.bf16.gmra.mxu2 %v1020_v46  ;;  %v925_v55 = vadd.f32 %v2965_v6, %v924_v5 }
 0x180   : > { %v986_v39 = vadd.f32 %v985_v53, %v937_v32 }
 0x181   : > { %v974_v4 = vadd.f32 %v973_v47, %v925_v55 }
 0x182   : > { %v1012_v34 = vmax.f32 %v986_v39, 0.0  ;;  %v1929_v39 = vld [vmem:[#allocation11 + $0x74] sm:$0xf] }
 0x183   : > { %v1007_v25 = vmax.f32 %v974_v4, 0.0  ;;  %v1907_v4 = vld [vmem:[#allocation8] sm:$0xff] }
 0x184   : > { %v1023_v17 = vpack.c.bf16 %v1012_v34, %v1011_v26  ;;  %1227 = vmatpush.bf16.msrb.mxu3 %v1907_v4  ;;  %v1871_v26 = vld [vmem:[#allocation11 + $0x78] sm:$0xf0] }
 0x185   : > { %v939_v30 = vpop.f32.mrf.mxu2  ;;  %v988_v59 = vpop.f32.mrf.mxu3  ;;  %v1874_v34 = vor.u32 %v1929_v39, %v1871_v26 }
 0x186   : > { %v926_v11 = vpop.f32.mrf.mxu0  ;;  %v975_v63 = vpop.f32.mrf.mxu1  ;;  %v940_v43 = vadd.f32 %v2965_v6, %v939_v30 }
 0x187   : > { %v927_v29 = vadd.f32 %v2965_v6, %v926_v11  ;;  %1444 = vmatpush.bf16.msrb.mxu1 %v1874_v34 }
 0x188   : > { %v989_v12 = vadd.f32 %v988_v59, %v940_v43 }
 0x189   : > { %v976_v33 = vadd.f32 %v975_v63, %v927_v29 }
 0x18a   : > { %v1013_v10 = vmax.f32 %v989_v12, 0.0 }
 0x18b   : > { %v1008_v38 = vmax.f32 %v976_v33, 0.0 }
 0x18d   : > { %v1021_v58 = vpack.c.bf16 %v1008_v38, %v1007_v25  ;;  %v941_v41 = vpop.f32.mrf.mxu2  ;;  %v990_v18 = vpop.f32.mrf.mxu3 }
 0x18e   : > { %v929_v15 = vpop.f32.mrf.mxu0  ;;  %v978_v24 = vpop.f32.mrf.mxu1  ;;  %v942_v54 = vadd.f32 %v2965_v6, %v941_v41  ;;  %v1870_v41 = vor.u32 %v1930_v62, %v1869_v60 }
 0x18f   : > { %1113 = vmatmul.bf16.gmra.mxu2 %v1021_v58  ;;  %v930_v8 = vadd.f32 %v2965_v6, %v929_v15  ;;  %v2986_v58 = vld [vmem:[%s3134_s4] ss:$0 sm:$0xff] }
 0x190   : > { %v991_v23 = vadd.f32 %v990_v18, %v942_v54  ;;  %1395 = vmatpush.bf16.msrb.mxu0 %v1870_v41  ;;  %v1863_v54 = vld [vmem:[#allocation11 + $0x68] sm:$0xf0] }
 0x191   : > { %v979_v40 = vadd.f32 %v978_v24, %v930_v8 }
 0x192   : > { %v1014_v14 = vmax.f32 %v991_v23, 0.0 }
 0x193   : > { %v1009_v28 = vmax.f32 %v979_v40, 0.0 }
 0x194   : > { %v1024_v45 = vpack.c.bf16 %v1014_v14, %v1013_v10  ;;  %v1853_v14 = vld [vmem:[#allocation11 + $0x50] sm:$0xf] }
 0x195   : > { %v944_v35 = vpop.f32.mrf.mxu2  ;;  %v993_v7 = vpop.f32.mrf.mxu3 }
 0x196   : > { %v931_v13 = vpop.f32.mrf.mxu0  ;;  %v980_v42 = vpop.f32.mrf.mxu1  ;;  %v945_v0 = vadd.f32 %v2965_v6, %v944_v35  ;;  %v1927_v35 = vld [vmem:[#allocation11 + $0x64] sm:$0xf] }
 0x197   : > { %v932_v2 = vadd.f32 %v2965_v6, %v931_v13  ;;  %v1866_v22 = vor.u32 %v1927_v35, %v1863_v54 }
 0x198   : > { %v994_v57 = vadd.f32 %v993_v7, %v945_v0 }
 0x199   : > { %v981_v48 = vadd.f32 %v980_v42, %v932_v2  ;;  %1445 = vmatpush.bf16.msrb.mxu1 %v1866_v22 }
 0x19a   : > { %v1015_v56 = vmax.f32 %v994_v57, 0.0  ;;  %v1923_v57 = vld [vmem:[#allocation11 + $0x44] sm:$0xf] }
 0x19b   : > { %v1010_v9 = vmax.f32 %v981_v48, 0.0 }
 0x19d   : > { %v1022_v51 = vpack.c.bf16 %v1010_v9, %v1009_v28  ;;  %v946_v44 = vpop.f32.mrf.mxu2  ;;  %v995_v49 = vpop.f32.mrf.mxu3 }
 0x19e   : > { %v947_v20 = vadd.f32 %v2965_v6, %v946_v44  ;;  %v1926_v44 = vld [vmem:[#allocation11 + $0x54] sm:$0xf0] }
 0x19f   : > { %1118 = vmatmul.bf16.gmra.mxu2 %v1022_v51 }
 0x1a0   : > { %v996_v3 = vadd.f32 %v995_v49, %v947_v20  ;;  %v1854_v49 = vor.u32 %v1926_v44, %v1853_v14 }
 0x1a2   : > { %v1016_v46 = vmax.f32 %v996_v3, 0.0 }
 0x1a4   : > { %v1025_v5 = vpack.c.bf16 %v1016_v46, %v1015_v56 }
 0x1a5   : > { %v949_v21 = vpop.f32.mrf.mxu2  ;;  %v998_v1 = vpop.f32.mrf.mxu3 }
 0x1a6   : > { %v950_v55 = vadd.f32 %v2965_v6, %v949_v21  ;;  %v1924_v21 = vld [vmem:[#allocation11 + $0x44] sm:$0xf0] }
 0x1a7   : > { %v1846_v3 = vor.u32 %v1924_v21, %v1845_v27 }
 0x1a8   : > { %v999_v29 = vadd.f32 %v998_v1, %v950_v55  ;;  %v1850_v1 = vor.u32 %v1923_v57, %v1847_v52  ;;  %v1837_v55 = vld [vmem:[#allocation11 + $0x30] sm:$0xf] }
 0x1aa   : > { %v1017_v33 = vmax.f32 %v999_v29, 0.0  ;;  %v1839_v29 = vld [vmem:[#allocation11 + $0x38] sm:$0xf0] }
 0x1ad   : > { %v951_v47 = vpop.f32.mrf.mxu2  ;;  %v1000_v63 = vpop.f32.mrf.mxu3 }
 0x1ae   : > { %v952_v11 = vadd.f32 %v2965_v6, %v951_v47 }
 0x1af   : > { %1123 = vmatmul.bf16.gmra.mxu2 %v1023_v17  ;;  %v1861_v17 = vld [vmem:[#allocation11 + $0x60] sm:$0xf] }
 0x1b0   : > { %v1001_v19 = vadd.f32 %v1000_v63, %v952_v11  ;;  %v1862_v43 = vor.u32 %v1928_v36, %v1861_v17  ;;  %v1922_v11 = vld [vmem:[#allocation11 + $0x34] sm:$0xf0]  ;;  %v1921_v63 = vld [vmem:[#allocation11 + $0x34] sm:$0xf] }
 0x1b1   : > { %v1838_v4 = vor.u32 %v1922_v11, %v1837_v55 }
 0x1b2   : > { %v1018_v25 = vmax.f32 %v1001_v19, 0.0  ;;  %1396 = vmatpush.bf16.msrb.mxu0 %v1862_v43  ;;  %v1829_v19 = vld [vmem:[#allocation11 + $0x20] sm:$0xf] }
 0x1b4   : > { %v1026_v38 = vpack.c.bf16 %v1018_v25, %v1017_v33  ;;  %v1920_v33 = vld [vmem:[#allocation11 + $0x24] sm:$0xf0]  ;;  %v1842_v25 = vor.u32 %v1921_v63, %v1839_v29 }
 0x1b6   : > { %1397 = vmatpush.bf16.msrb.mxu0 %v1854_v49 }
 0x1ba   : > { %1398 = vmatpush.bf16.msrb.mxu0 %v1846_v3 }
 0x1be   : > { %1399 = vmatpush.bf16.msrb.mxu0 %v1838_v4 }
 0x1bf   : > { %1128 = vmatmul.bf16.gmra.mxu2 %v1024_v45  ;;  %v1925_v45 = vld [vmem:[#allocation11 + $0x54] sm:$0xf] }
 0x1c0   : > { %v1858_v0 = vor.u32 %v1925_v45, %v1855_v50 }
 0x1c2   : > { %1446 = vmatpush.bf16.msrb.mxu1 %v1858_v0 }
 0x1c6   : > { %1447 = vmatpush.bf16.msrb.mxu1 %v1850_v1 }
 0x1ca   : > { %1448 = vmatpush.bf16.msrb.mxu1 %v1842_v25 }
 0x1cf   : > { %1133 = vmatmul.bf16.gmra.mxu2 %v1025_v5 }
 0x1df   : > { %1138 = vmatmul.bf16.gmra.mxu2 %v1026_v38  ;;  %v1919_v38 = vld [vmem:[#allocation11 + $0x24] sm:$0xf] }
 0x1f2   : > { %v1104_v37 = vpop.f32.mrf.mxu2 }
 0x1f3   : > { %v1105_v24 = vadd.f32 %v2986_v58, %v1104_v37  ;;  %v1831_v37 = vld [vmem:[#allocation11 + $0x28] sm:$0xf0] }
 0x1fa   : > { %v1106_v15 = vpop.f32.mrf.mxu2 }
 0x1fb   : > { %v1107_v6 = vadd.f32 %v2986_v58, %v1106_v15 }
 0x1fd   : > { %v1144_v16 = vpack.c.bf16 %v1107_v6, %v1105_v24  ;;  %v1830_v24 = vor.u32 %v1920_v33, %v1829_v19  ;;  %v1834_v6 = vor.u32 %v1919_v38, %v1831_v37 }
 0x1ff   : > { %1228 = vmatmul.bf16.vlgmr.msrb.gmra.mxu3 %v1144_v16  ;;  %v1821_v16 = vld [vmem:[#allocation11 + $0x10] sm:$0xf]  ;;  %1400 = vmatpush.bf16.msrb.mxu0 %v1830_v24 }
 0x200   : > { %1449 = vmatpush.bf16.msrb.mxu1 %v1834_v6 }
 0x202   : > { %v1109_v8 = vpop.f32.mrf.mxu2 }
 0x203   : > { %v1110_v13 = vadd.f32 %v2986_v58, %v1109_v8  ;;  %v1918_v8 = vld [vmem:[#allocation11 + $0x14] sm:$0xf0] }
 0x20a   : > { %v1111_v53 = vpop.f32.mrf.mxu2 }
 0x20b   : > { %v1112_v40 = vadd.f32 %v2986_v58, %v1111_v53  ;;  %v1917_v53 = vld [vmem:[#allocation11 + $0x14] sm:$0xf] }
 0x20d   : > { %v1145_v2 = vpack.c.bf16 %v1112_v40, %v1110_v13  ;;  %v1823_v13 = vld [vmem:[#allocation11 + $0x18] sm:$0xf0]  ;;  %v1822_v40 = vor.u32 %v1918_v8, %v1821_v16 }
 0x20f   : > { %1233 = vmatmul.bf16.gmra.mxu3 %v1145_v2  ;;  %v1826_v2 = vor.u32 %v1917_v53, %v1823_v13  ;;  %1401 = vmatpush.bf16.msrb.mxu0 %v1822_v40 }
 0x211   : > { %1450 = vmatpush.bf16.msrb.mxu1 %v1826_v2 }
 0x212   : > { %v1114_v42 = vpop.f32.mrf.mxu2 }
 0x213   : > { %v1115_v28 = vadd.f32 %v2986_v58, %v1114_v42 }
 0x21a   : > { %v1116_v48 = vpop.f32.mrf.mxu2 }
 0x21b   : > { %v1117_v9 = vadd.f32 %v2986_v58, %v1116_v48 }
 0x21d   : > { %v1146_v30 = vpack.c.bf16 %v1117_v9, %v1115_v28 }
 0x21f   : > { %1238 = vmatmul.bf16.gmra.mxu3 %v1146_v30 }
 0x222   : > { %v1119_v51 = vpop.f32.mrf.mxu2 }
 0x223   : > { %v1120_v59 = vadd.f32 %v2986_v58, %v1119_v51  ;;  %v1813_v51 = vld [vmem:[#allocation11] sm:$0xf] }
 0x22a   : > { %v1121_v61 = vpop.f32.mrf.mxu2 }
 0x22b   : > { %v1122_v31 = vadd.f32 %v2986_v58, %v1121_v61  ;;  %v1916_v61 = vld [vmem:[#allocation11 + $0x4] sm:$0xf0] }
 0x22d   : > { %v1147_v32 = vpack.c.bf16 %v1122_v31, %v1120_v59  ;;  %v1915_v59 = vld [vmem:[#allocation11 + $0x4] sm:$0xf]  ;;  %v1814_v31 = vor.u32 %v1916_v61, %v1813_v51 }
 0x22f   : > { %1243 = vmatmul.bf16.gmra.mxu3 %v1147_v32  ;;  %v1815_v32 = vld [vmem:[#allocation11 + $0x8] sm:$0xf0]  ;;  %1402 = vmatpush.bf16.msrb.mxu0 %v1814_v31  ;;  %v1309_v31 = vld [vmem:[%s3138_s8] sm:$0x3] }
 0x230   : > { %v1818_v60 = vor.u32 %v1915_v59, %v1815_v32  ;;  %v3025_v32 = vperm.slane %v1309_v31, 0 }
 0x232   : > { %v1124_v18 = vpop.f32.mrf.mxu2  ;;  %1451 = vmatpush.bf16.msrb.mxu1 %v1818_v60  ;;  %v3027_v60 = vperm.slane %v1309_v31, 1 }
 0x233   : > { %v1125_v12 = vadd.f32 %v2986_v58, %v1124_v18  ;;  %v3004_v18 = vld [vmem:[#allocation10] ss:$0 sm:$0xff] }
 0x23a   : > { %v1126_v7 = vpop.f32.mrf.mxu2 }
 0x23b   : > { %v1127_v23 = vadd.f32 %v2986_v58, %v1126_v7 }
 0x23d   : > { %v1148_v10 = vpack.c.bf16 %v1127_v23, %v1125_v12 }
 0x23f   : > { %1248 = vmatmul.bf16.gmra.mxu3 %v1148_v10 }
 0x242   : > { %v1129_v20 = vpop.f32.mrf.mxu2 }
 0x243   : > { %v1130_v46 = vadd.f32 %v2986_v58, %v1129_v20 }
 0x24a   : > { %v1131_v56 = vpop.f32.mrf.mxu2 }
 0x24b   : > { %v1132_v5 = vadd.f32 %v2986_v58, %v1131_v56 }
 0x24d   : > { %v1149_v47 = vpack.c.bf16 %v1132_v5, %v1130_v46 }
 0x24f   : > { %1253 = vmatmul.bf16.gmra.mxu3 %v1149_v47 }
 0x252   : > { %v1134_v15 = vpop.f32.mrf.mxu2 }
 0x253   : > { %v1135_v48 = vadd.f32 %v2986_v58, %v1134_v15 }
 0x25a   : > { %v1136_v42 = vpop.f32.mrf.mxu2 }
 0x25b   : > { %v1137_v28 = vadd.f32 %v2986_v58, %v1136_v42 }
 0x25d   : > { %v1150_v9 = vpack.c.bf16 %v1137_v28, %v1135_v48 }
 0x25f   : > { %1258 = vmatmul.bf16.gmra.mxu3 %v1150_v9 }
 0x262   : > { %v1139_v30 = vpop.f32.mrf.mxu2 }
 0x263   : > { %v1140_v39 = vadd.f32 %v2986_v58, %v1139_v30 }
 0x26a   : > { %v1141_v62 = vpop.f32.mrf.mxu2 }
 0x26b   : > { %v1142_v41 = vadd.f32 %v2986_v58, %v1141_v62 }
 0x26d   : > { %v1151_v26 = vpack.c.bf16 %v1142_v41, %v1140_v39 }
 0x26f   : > { %1263 = vmatmul.bf16.gmra.mxu3 %v1151_v26 }
 0x282   : > { %v1229_v34 = vpop.f32.mrf.mxu3 }
 0x283   : > { %v1230_v17 = vadd.f32 %v3004_v18, %v1229_v34 }
 0x285   : > { %v1269_v43 = vmax.f32 %v1230_v17, 0.0 }
 0x28a   : > { %v1231_v36 = vpop.f32.mrf.mxu3 }
 0x28b   : > { %v1232_v35 = vadd.f32 %v3004_v18, %v1231_v36 }
 0x28d   : > { %v1270_v54 = vmax.f32 %v1232_v35, 0.0 }
 0x28f   : > { %v1285_v22 = vpack.c.bf16 %v1270_v54, %v1269_v43 }
 0x291   : > { %1403 = vmatmul.bf16.vlgmr.msrb.gmra.mxu0 %v1285_v22  ;;  %1452 = vmatmul.bf16.vlgmr.msrb.gmra.mxu1 %v1285_v22 }
 0x292   : > { %v1234_v7 = vpop.f32.mrf.mxu3 }
 0x293   : > { %v1235_v12 = vadd.f32 %v3004_v18, %v1234_v7 }
 0x295   : > { %v1271_v10 = vmax.f32 %v1235_v12, 0.0 }
 0x29a   : > { %v1236_v23 = vpop.f32.mrf.mxu3 }
 0x29b   : > { %v1237_v58 = vadd.f32 %v3004_v18, %v1236_v23 }
 0x29d   : > { %v1272_v14 = vmax.f32 %v1237_v58, 0.0 }
 0x29f   : > { %v1286_v44 = vpack.c.bf16 %v1272_v14, %v1271_v10 }
 0x2a1   : > { %1408 = vmatmul.bf16.gmra.mxu0 %v1286_v44  ;;  %1457 = vmatmul.bf16.gmra.mxu1 %v1286_v44 }
 0x2a2   : > { %v1239_v45 = vpop.f32.mrf.mxu3 }
 0x2a3   : > { %v1240_v49 = vadd.f32 %v3004_v18, %v1239_v45 }
 0x2a5   : > { %v1273_v20 = vmax.f32 %v1240_v49, 0.0 }
 0x2aa   : > { %v1241_v50 = vpop.f32.mrf.mxu3 }
 0x2ab   : > { %v1242_v0 = vadd.f32 %v3004_v18, %v1241_v50 }
 0x2ad   : > { %v1274_v27 = vmax.f32 %v1242_v0, 0.0 }
 0x2af   : > { %v1287_v21 = vpack.c.bf16 %v1274_v27, %v1273_v20 }
 0x2b1   : > { %1413 = vmatmul.bf16.gmra.mxu0 %v1287_v21  ;;  %1462 = vmatmul.bf16.gmra.mxu1 %v1287_v21 }
 0x2b2   : > { %v1244_v57 = vpop.f32.mrf.mxu3 }
 0x2b3   : > { %v1245_v3 = vadd.f32 %v3004_v18, %v1244_v57 }
 0x2b5   : > { %v1275_v56 = vmax.f32 %v1245_v3, 0.0 }
 0x2ba   : > { %v1246_v52 = vpop.f32.mrf.mxu3 }
 0x2bb   : > { %v1247_v1 = vadd.f32 %v3004_v18, %v1246_v52 }
 0x2bd   : > { %v1276_v46 = vmax.f32 %v1247_v1, 0.0 }
 0x2bf   : > { %v1288_v5 = vpack.c.bf16 %v1276_v46, %v1275_v56 }
 0x2c1   : > { %1418 = vmatmul.bf16.gmra.mxu0 %v1288_v5  ;;  %1467 = vmatmul.bf16.gmra.mxu1 %v1288_v5 }
 0x2c2   : > { %v1249_v47 = vpop.f32.mrf.mxu3 }
 0x2c3   : > { %v1250_v55 = vadd.f32 %v3004_v18, %v1249_v47 }
 0x2c5   : > { %v1277_v4 = vmax.f32 %v1250_v55, 0.0 }
 0x2ca   : > { %v1251_v11 = vpop.f32.mrf.mxu3 }
 0x2cb   : > { %v1252_v63 = vadd.f32 %v3004_v18, %v1251_v11 }
 0x2cd   : > { %v1278_v29 = vmax.f32 %v1252_v63, 0.0 }
 0x2cf   : > { %v1289_v19 = vpack.c.bf16 %v1278_v29, %v1277_v4 }
 0x2d1   : > { %1423 = vmatmul.bf16.gmra.mxu0 %v1289_v19  ;;  %1472 = vmatmul.bf16.gmra.mxu1 %v1289_v19 }
 0x2d2   : > { %v1254_v33 = vpop.f32.mrf.mxu3 }
 0x2d3   : > { %v1255_v25 = vadd.f32 %v3004_v18, %v1254_v33 }
 0x2d5   : > { %v1279_v15 = vmax.f32 %v1255_v25, 0.0 }
 0x2da   : > { %v1256_v38 = vpop.f32.mrf.mxu3 }
 0x2db   : > { %v1257_v37 = vadd.f32 %v3004_v18, %v1256_v38 }
 0x2dd   : > { %v1280_v24 = vmax.f32 %v1257_v37, 0.0 }
 0x2df   : > { %v1290_v6 = vpack.c.bf16 %v1280_v24, %v1279_v15 }
 0x2e1   : > { %1428 = vmatmul.bf16.gmra.mxu0 %v1290_v6  ;;  %1477 = vmatmul.bf16.gmra.mxu1 %v1290_v6 }
 0x2e2   : > { %v1259_v16 = vpop.f32.mrf.mxu3 }
 0x2e3   : > { %v1260_v8 = vadd.f32 %v3004_v18, %v1259_v16 }
 0x2e5   : > { %v1281_v40 = vmax.f32 %v1260_v8, 0.0 }
 0x2ea   : > { %v1261_v53 = vpop.f32.mrf.mxu3 }
 0x2eb   : > { %v1262_v13 = vadd.f32 %v3004_v18, %v1261_v53 }
 0x2ed   : > { %v1282_v2 = vmax.f32 %v1262_v13, 0.0 }
 0x2ef   : > { %v1291_v42 = vpack.c.bf16 %v1282_v2, %v1281_v40 }
 0x2f1   : > { %1433 = vmatmul.bf16.gmra.mxu0 %v1291_v42  ;;  %1482 = vmatmul.bf16.gmra.mxu1 %v1291_v42 }
 0x2f2   : > { %v1264_v48 = vpop.f32.mrf.mxu3 }
 0x2f3   : > { %v1265_v28 = vadd.f32 %v3004_v18, %v1264_v48 }
 0x2f5   : > { %v1283_v51 = vmax.f32 %v1265_v28, 0.0 }
 0x2fa   : > { %v1266_v9 = vpop.f32.mrf.mxu3 }
 0x2fb   : > { %v1267_v30 = vadd.f32 %v3004_v18, %v1266_v9 }
 0x2fd   : > { %v1284_v61 = vmax.f32 %v1267_v30, 0.0 }
 0x2ff   : > { %v1292_v59 = vpack.c.bf16 %v1284_v61, %v1283_v51 }
 0x301   : > { %1438 = vmatmul.bf16.gmra.mxu0 %v1292_v59  ;;  %1487 = vmatmul.bf16.gmra.mxu1 %v1292_v59 }
 0x30e   : > { %v1404_v62 = vpop.f32.mrf.mxu0  ;;  %v1453_v39 = vpop.f32.mrf.mxu1 }
 0x30f   : > { %v1405_v41 = vadd.f32 %v1404_v62, %v3025_v32  ;;  %v1454_v26 = vadd.f32 %v1453_v39, %v3027_v60 }
 0x311   : > { %1493 = vst [vmem:[%s3033_s24] sm:$0xff] %v1405_v41 }
 0x312   : > { %1494 = vst [vmem:[%s3033_s24 + $0x8] sm:$0xff] %v1454_v26 }
 0x316   : > { %v1406_v34 = vpop.f32.mrf.mxu0  ;;  %v1455_v18 = vpop.f32.mrf.mxu1 }
 0x317   : > { %v1407_v17 = vadd.f32 %v1406_v34, %v3025_v32  ;;  %v1456_v36 = vadd.f32 %v1455_v18, %v3027_v60 }
 0x319   : > { %1495 = vst [vmem:[%s3033_s24 + $0x10] sm:$0xff] %v1407_v17 }
 0x31a   : > { %1496 = vst [vmem:[%s3033_s24 + $0x18] sm:$0xff] %v1456_v36 }
 0x31e   : > { %v1409_v35 = vpop.f32.mrf.mxu0  ;;  %v1458_v43 = vpop.f32.mrf.mxu1 }
 0x31f   : > { %v1410_v54 = vadd.f32 %v1409_v35, %v3025_v32  ;;  %v1459_v22 = vadd.f32 %v1458_v43, %v3027_v60 }
 0x321   : > { %1497 = vst [vmem:[%s3033_s24 + $0x20] sm:$0xff] %v1410_v54 }
 0x322   : > { %1498 = vst [vmem:[%s3033_s24 + $0x28] sm:$0xff] %v1459_v22 }
 0x326   : > { %v1411_v7 = vpop.f32.mrf.mxu0  ;;  %v1460_v12 = vpop.f32.mrf.mxu1 }
 0x327   : > { %v1412_v23 = vadd.f32 %v1411_v7, %v3025_v32  ;;  %v1461_v58 = vadd.f32 %v1460_v12, %v3027_v60 }
 0x329   : > { %1499 = vst [vmem:[%s3033_s24 + $0x30] sm:$0xff] %v1412_v23 }
 0x32a   : > { %1500 = vst [vmem:[%s3033_s24 + $0x38] sm:$0xff] %v1461_v58 }
 0x32e   : > { %v1414_v10 = vpop.f32.mrf.mxu0  ;;  %v1463_v14 = vpop.f32.mrf.mxu1 }
 0x32f   : > { %v1415_v44 = vadd.f32 %v1414_v10, %v3025_v32  ;;  %v1464_v45 = vadd.f32 %v1463_v14, %v3027_v60 }
 0x331   : > { %1501 = vst [vmem:[%s3033_s24 + $0x40] sm:$0xff] %v1415_v44 }
 0x332   : > { %1502 = vst [vmem:[%s3033_s24 + $0x48] sm:$0xff] %v1464_v45 }
 0x336   : > { %v1416_v49 = vpop.f32.mrf.mxu0  ;;  %v1465_v50 = vpop.f32.mrf.mxu1 }
 0x337   : > { %v1417_v0 = vadd.f32 %v1416_v49, %v3025_v32  ;;  %v1466_v20 = vadd.f32 %v1465_v50, %v3027_v60 }
 0x339   : > { %1503 = vst [vmem:[%s3033_s24 + $0x50] sm:$0xff] %v1417_v0 }
 0x33a   : > { %1504 = vst [vmem:[%s3033_s24 + $0x58] sm:$0xff] %v1466_v20 }
 0x33e   : > { %v1419_v27 = vpop.f32.mrf.mxu0  ;;  %v1468_v21 = vpop.f32.mrf.mxu1 }
 0x33f   : > { %v1420_v57 = vadd.f32 %v1419_v27, %v3025_v32  ;;  %v1469_v3 = vadd.f32 %v1468_v21, %v3027_v60 }
 0x341   : > { %1505 = vst [vmem:[%s3033_s24 + $0x60] sm:$0xff] %v1420_v57 }
 0x342   : > { %1506 = vst [vmem:[%s3033_s24 + $0x68] sm:$0xff] %v1469_v3 }
 0x346   : > { %v1421_v52 = vpop.f32.mrf.mxu0  ;;  %v1470_v1 = vpop.f32.mrf.mxu1 }
 0x347   : > { %v1422_v56 = vadd.f32 %v1421_v52, %v3025_v32  ;;  %v1471_v46 = vadd.f32 %v1470_v1, %v3027_v60 }
 0x349   : > { %1507 = vst [vmem:[%s3033_s24 + $0x70] sm:$0xff] %v1422_v56 }
 0x34a   : > { %1508 = vst [vmem:[%s3033_s24 + $0x78] sm:$0xff] %v1471_v46 }
 0x34e   : > { %v1424_v5 = vpop.f32.mrf.mxu0  ;;  %v1473_v47 = vpop.f32.mrf.mxu1 }
 0x34f   : > { %v1425_v55 = vadd.f32 %v1424_v5, %v3025_v32  ;;  %v1474_v11 = vadd.f32 %v1473_v47, %v3027_v60 }
 0x351   : > { %1509 = vst [vmem:[%s3033_s24 + $0x80] sm:$0xff] %v1425_v55 }
 0x352   : > { %1510 = vst [vmem:[%s3033_s24 + $0x88] sm:$0xff] %v1474_v11 }
 0x356   : > { %v1426_v63 = vpop.f32.mrf.mxu0  ;;  %v1475_v4 = vpop.f32.mrf.mxu1 }
 0x357   : > { %v1427_v29 = vadd.f32 %v1426_v63, %v3025_v32  ;;  %v1476_v19 = vadd.f32 %v1475_v4, %v3027_v60 }
 0x359   : > { %1511 = vst [vmem:[%s3033_s24 + $0x90] sm:$0xff] %v1427_v29 }
 0x35a   : > { %1512 = vst [vmem:[%s3033_s24 + $0x98] sm:$0xff] %v1476_v19 }
 0x35e   : > { %v1429_v33 = vpop.f32.mrf.mxu0  ;;  %v1478_v25 = vpop.f32.mrf.mxu1 }
 0x35f   : > { %v1430_v38 = vadd.f32 %v1429_v33, %v3025_v32  ;;  %v1479_v37 = vadd.f32 %v1478_v25, %v3027_v60 }
 0x361   : > { %1513 = vst [vmem:[%s3033_s24 + $0xa0] sm:$0xff] %v1430_v38 }
 0x362   : > { %1514 = vst [vmem:[%s3033_s24 + $0xa8] sm:$0xff] %v1479_v37 }
 0x366   : > { %v1431_v15 = vpop.f32.mrf.mxu0  ;;  %v1480_v24 = vpop.f32.mrf.mxu1 }
 0x367   : > { %v1432_v6 = vadd.f32 %v1431_v15, %v3025_v32  ;;  %v1481_v16 = vadd.f32 %v1480_v24, %v3027_v60 }
 0x369   : > { %1515 = vst [vmem:[%s3033_s24 + $0xb0] sm:$0xff] %v1432_v6 }
 0x36a   : > { %1516 = vst [vmem:[%s3033_s24 + $0xb8] sm:$0xff] %v1481_v16 }
 0x36e   : > { %v1434_v8 = vpop.f32.mrf.mxu0  ;;  %v1483_v53 = vpop.f32.mrf.mxu1 }
 0x36f   : > { %v1435_v13 = vadd.f32 %v1434_v8, %v3025_v32  ;;  %v1484_v40 = vadd.f32 %v1483_v53, %v3027_v60 }
 0x371   : > { %1517 = vst [vmem:[%s3033_s24 + $0xc0] sm:$0xff] %v1435_v13 }
 0x372   : > { %1518 = vst [vmem:[%s3033_s24 + $0xc8] sm:$0xff] %v1484_v40 }
 0x376   : > { %v1436_v2 = vpop.f32.mrf.mxu0  ;;  %v1485_v42 = vpop.f32.mrf.mxu1 }
 0x377   : > { %v1437_v48 = vadd.f32 %v1436_v2, %v3025_v32  ;;  %v1486_v28 = vadd.f32 %v1485_v42, %v3027_v60 }
 0x379   : > { %1519 = vst [vmem:[%s3033_s24 + $0xd0] sm:$0xff] %v1437_v48 }
 0x37a   : > { %1520 = vst [vmem:[%s3033_s24 + $0xd8] sm:$0xff] %v1486_v28 }
 0x37e   : > { %v1439_v9 = vpop.f32.mrf.mxu0  ;;  %v1488_v30 = vpop.f32.mrf.mxu1 }
 0x37f   : > { %v1440_v51 = vadd.f32 %v1439_v9, %v3025_v32  ;;  %v1489_v61 = vadd.f32 %v1488_v30, %v3027_v60 }
 0x381   : > { %1521 = vst [vmem:[%s3033_s24 + $0xe0] sm:$0xff] %v1440_v51 }
 0x382   : > { %1522 = vst [vmem:[%s3033_s24 + $0xe8] sm:$0xff] %v1489_v61 }
 0x386   : > { %v1441_v59 = vpop.f32.mrf.mxu0  ;;  %v1490_v31 = vpop.f32.mrf.mxu1 }
 0x387   : > { %v1442_v62 = vadd.f32 %v1441_v59, %v3025_v32  ;;  %v1491_v39 = vadd.f32 %v1490_v31, %v3027_v60 }
 0x389   : > { %1523 = vst [vmem:[%s3033_s24 + $0xf0] sm:$0xff] %v1442_v62 }
 0x38a   : > { %1524 = vst [vmem:[%s3033_s24 + $0xf8] sm:$0xff] %v1491_v39 }
 0x38b   : > { %2296 = shalt.err (!%p2293_p8)
}
 0x38c   : > { %s2360_s14 = smov 256   ;;  %s2361_s29 = smov 16  }
 0x38d   : > { %1971 = dma.vmem_to_hbm [thread:$0]  (%p2501_p13), %s1540_s26, 4096, %s1542_s5, %s1526_s16, %s2360_s14, %s2360_s14, %s2361_s29  }
 0x38e PF: > { %p2008_p9 = scmp.ge.s32.totalorder %s2347_s12, 2  ;;  %s1556_s24 = sand.u32 1, %s2335_s30  }
 0x38f   : > { %s1557_s27 = scalar_lea.sflag [#allocation4], %s1556_s24 }
 0x390   : > { %p1994_p10 = pnand %p2008_p9, %p2507_p4 }
 0x392   : > { %p1995_p11 = pneg %p1994_p10 }
 0x394   : > { %2330 = dma.done.wait (%p1995_p11), %s1557_s27, 4096  }
 0x395   : > { %2332 = vsyncadd (%p1995_p11), %s1557_s27, 4294963200  ;;  %p25_p0 = scmp.ge.s32.totalorder %s2477_s13, 6   ;;  %s3161_s30 = smov %s2339_s10 }
 0x396   : > { %s3162_s10 = smov %s2343_s11  ;;  %s3163_s11 = smov %s2489_s20 }
 0x397   : > { %s3164_s12 = smov %s2477_s13  ;;  %27 = sbr.rel (!%p25_p0) target bundleno = 13 (0xd), region = 121 }
 0x39c   :  { %1563 = vsyncpa [#allocation3], 1 }
 0x39d   :  { %1565 = vsyncpa [#allocation3 + $0x1], 1 }
 0x39e   :  { %1566 = vsyncpa [#allocation6], 1 }
 0x39f   :  { %1567 = vsyncpa [#allocation9], 1 }
 0x3a0   :  { %1568 = vsyncpa [#allocation12], 1 }
 0x3a1   :  { %1569 = vsyncpa [#allocation4], 1 }
 0x3a2   :  { %1571 = vsyncpa [#allocation4 + $0x1], 1 }

</bundles_post_ra>
